<compile_context>
chip_gen: v6e
topology: v6e:2x2x1
jax: 0.10.0
libtpu: 0.0.40
codegen_flags: <defaults>
</compile_context>

<pallas_src>
import numpy as np
import jax
import jax.numpy as jnp
from jax.experimental import pallas as pl
from jax.experimental.pallas import tpu as pltpu


def _round_up(x, m):
    return ((x + m - 1) // m) * m


def _cdiv(a, b):
    return -(-a // b)


def resample_indices(T, step, pivot, base):
    """Indices reproducing the PyTorch negative-index fill loops:
       out[:, pos] = x[:, -base + (pos + pivot) * step] for pos in [-L, -1], L = T//step."""
    L = T // step
    p = np.arange(L)
    return T - base + (p - L + pivot) * step


# ---------------------------------------------------------------------------
# Fused Pallas kernel:
#   (once per row tile)  contexts -> MATT -> softmax attention weights
#   (every column tile)  per-branch score matmul, immediately attention-fused
# ---------------------------------------------------------------------------
def _fused_kernel(b3_ref,                     # SMEM (nb,)               f32
                  x_ref,                      # (nb, tn, F3p)            bf16  (row-streamed)
                  ws_ref, bs_ref,             # (nb, F3p, Cb) bf16 / (nb, 1, Cb) f32  (col-streamed)
                  wc_ref, bc_ref,             # (nb, F3p, H2p) bf16 / (nb, 1, H2p) f32 (resident)
                  w1_ref, b1_ref,             # (nb*H2p, in4p) bf16 / (1, in4p) f32    (resident)
                  w2_ref, b2_ref,             # (in4p, in8p) bf16 / (1, in8p) f32      (resident)
                  w3t_ref,                    # (nb, in8p)               f32           (resident)
                  out_ref,                    # (tn, Cb)
                  attn_ref):                  # scratch (nb, tn, 1) f32 -- persists across col axis
    nb = x_ref.shape[0]
    j = pl.program_id(1)

    # ---- Attention weights, computed once per row tile (first column step). ----
    @pl.when(j == 0)
    def _():
        ctxs = []
        for i in range(nb):
            c_i = jnp.tanh(
                jnp.dot(x_ref[i], wc_ref[i], preferred_element_type=jnp.float32)
                + bc_ref[i])
            ctxs.append(c_i.astype(jnp.bfloat16))                          # (tn, H2p)

        # MATT layer 1: single fused MXU dot over lane-concatenated contexts.
        ctx = jnp.concatenate(ctxs, axis=-1)                               # (tn, nb*H2p)
        h1 = jnp.maximum(
            jnp.dot(ctx, w1_ref[...], preferred_element_type=jnp.float32)
            + b1_ref[...], 0.0).astype(jnp.bfloat16)                       # (tn, in4p)

        # MATT layer 2.
        h2 = jnp.maximum(
            jnp.dot(h1, w2_ref[...], preferred_element_type=jnp.float32)
            + b2_ref[...], 0.0)                                            # (tn, in8p)

        # MATT layer 3: output width = nb (2-3) -> VPU mul + lane reduce, not MXU.
        w3t = w3t_ref[...]                                                 # (nb, in8p)
        logits = [jnp.sum(h2 * w3t[i:i + 1, :], axis=-1, keepdims=True) + b3_ref[i]
                  for i in range(nb)]                                      # each (tn, 1)

        # Softmax over branches (f32), cached in scratch for all column tiles.
        mx = logits[0]
        for i in range(1, nb):
            mx = jnp.maximum(mx, logits[i])
        exps = [jnp.exp(l - mx) for l in logits]
        denom = exps[0]
        for i in range(1, nb):
            denom = denom + exps[i]
        inv = pl.reciprocal(denom, approx=True)                            # EUP slot
        for i in range(nb):
            attn_ref[i] = exps[i] * inv

    # ---- Attention-weighted score fusion: one (tn, Cb) score tile live at a time. ----
    acc = attn_ref[0] * (
        jnp.dot(x_ref[0], ws_ref[0], preferred_element_type=jnp.float32) + bs_ref[0])
    for i in range(1, nb):
        acc = acc + attn_ref[i] * (
            jnp.dot(x_ref[i], ws_ref[i], preferred_element_type=jnp.float32) + bs_ref[i])
    out_ref[...] = acc.astype(out_ref.dtype)


# ---------------------------------------------------------------------------
# Wrapper: static fast->slow gather + pallas_call with (rows, class-cols) grid
# ---------------------------------------------------------------------------
def forward_pallas(params, inputs, alphas, block_rows=None, col_block=512,
                   out_dtype=jnp.float32):
    min_a, max_a = min(alphas), max(alphas)
    n = len(inputs)
    B, T, _ = inputs[0][0].shape

    # Fold crop + input-resample + output-resample/slice into one static index
    # array per branch (exact equivalent of the PyTorch fill loops; the branch
    # stubs are position-wise, so gathering inputs first is identical).
    xs_slow = []
    for i in range(n):
        off = 12 if alphas[i] != 0.5 else 0
        Ti = T - off
        if i > 0:
            step = int(alphas[i] / min_a)
            idx_in = resample_indices(Ti, step, int(1.0 / alphas[i]), int(1.0 / min_a))
            Tm = Ti // step
        else:
            idx_in, Tm = np.arange(Ti), Ti
        if i < n - 1:
            step = int(max_a / alphas[i])
            idx_out = resample_indices(Tm, step, int(1.0 / max_a), int(1.0 / alphas[i]))
        else:
            idx_out = np.arange(3, Tm)
        idx = jnp.asarray(idx_in[idx_out] + off, jnp.int32)
        x = jnp.concatenate([jnp.take(xm, idx, axis=1) for xm in inputs[i]], axis=-1)
        xs_slow.append(x)                                                  # (B, T_slow, 3F)

    Ts = xs_slow[0].shape[1]
    assert all(v.shape[1] == Ts for v in xs_slow)
    N, F3, nb = B * Ts, xs_slow[0].shape[-1], n

    C = params["branches"][0]["ws"].shape[-1]
    H2 = params["branches"][0]["wc"].shape[-1]
    mp = params["matt"]
    in4, in8 = mp["w1"].shape[1], mp["w2"].shape[1]

    # Generation-tuned VMEM budget / default row tile (v5e/v6e: 128 MiB, v7x: 64 MiB).
    try:
        vmem_cap = pltpu.get_tpu_info().vmem_capacity_bytes
    except Exception:
        vmem_cap = 64 * 1024 * 1024
    vmem_limit = max(32 * 1024 * 1024, min(vmem_cap * 3 // 4, 110 * 1024 * 1024))
    if block_rows is None:
        block_rows = 512 if vmem_cap >= 100 * 1024 * 1024 else 256

    # Lane-align every contraction / output dim to 128 (zero padding; exact).
    F3p = _round_up(F3, 128)
    H2p = _round_up(H2, 128)
    in4p = _round_up(in4, 128)
    in8p = _round_up(in8, 128)
    Cb = min(col_block, _round_up(C, 128))        # class-column tile (multiple of 128)
    Cpad = _round_up(C, Cb)
    n_col = Cpad // Cb

    # Row tiling: minimal padding, >=2 steps when possible so both v7x TCs work.
    n_row = max(1, _cdiv(N, block_rows))
    if N >= 32:
        n_row = max(n_row, 2)
    tn = _round_up(_cdiv(N, n_row), 16)
    n_row = _cdiv(N, tn)
    n_pad = n_row * tn

    x = jnp.stack([v.reshape(N, F3) for v in xs_slow], axis=0)
    x = jnp.pad(x, ((0, 0), (0, n_pad - N), (0, F3p - F3))).astype(jnp.bfloat16)

    ws = jnp.stack([bp["ws"] for bp in params["branches"]], 0)
    ws = jnp.pad(ws, ((0, 0), (0, F3p - F3), (0, Cpad - C))).astype(jnp.bfloat16)
    bs = jnp.stack([bp["bs"] for bp in params["branches"]], 0).reshape(nb, 1, C)
    bs = jnp.pad(bs, ((0, 0), (0, 0), (0, Cpad - C))).astype(jnp.float32)
    wc = jnp.stack([bp["wc"] for bp in params["branches"]], 0)
    wc = jnp.pad(wc, ((0, 0), (0, F3p - F3), (0, H2p - H2))).astype(jnp.bfloat16)
    bc = jnp.stack([bp["bc"] for bp in params["branches"]], 0).reshape(nb, 1, H2)
    bc = jnp.pad(bc, ((0, 0), (0, 0), (0, H2p - H2))).astype(jnp.float32)

    w1 = mp["w1"].reshape(nb, H2, in4)
    w1 = jnp.pad(w1, ((0, 0), (0, H2p - H2), (0, in4p - in4)))
    w1 = w1.reshape(nb * H2p, in4p).astype(jnp.bfloat16)        # fused layer-1 operand
    b1 = jnp.pad(mp["b1"].reshape(1, in4), ((0, 0), (0, in4p - in4))).astype(jnp.float32)
    w2 = jnp.pad(mp["w2"], ((0, in4p - in4), (0, in8p - in8))).astype(jnp.bfloat16)
    b2 = jnp.pad(mp["b2"].reshape(1, in8), ((0, 0), (0, in8p - in8))).astype(jnp.float32)
    w3t = jnp.pad(mp["w3"].T, ((0, 0), (0, in8p - in8))).astype(jnp.float32)   # (nb, in8p)
    b3 = mp["b3"].reshape(nb).astype(jnp.float32)

    def run(weight_mode):
        def resident(shape, imap):
            if weight_mode is None:
                return pl.BlockSpec(shape, imap)
            return pl.BlockSpec(shape, imap, pipeline_mode=weight_mode)

        res3 = lambda i, j: (0, 0, 0)
        res2 = lambda i, j: (0, 0)
        return pl.pallas_call(
            _fused_kernel,
            out_shape=jax.ShapeDtypeStruct((n_pad, Cpad), out_dtype),
            grid_spec=pltpu.PrefetchScalarGridSpec(
                num_scalar_prefetch=0,
                grid=(n_row, n_col),
                in_specs=[
                    pl.BlockSpec(memory_space=pltpu.MemorySpace.SMEM),      # b3 scalars
                    pl.BlockSpec((nb, tn, F3p), lambda i, j: (0, i, 0)),    # x  (row-streamed)
                    pl.BlockSpec((nb, F3p, Cb), lambda i, j: (0, 0, j)),    # ws (col-streamed)
                    pl.BlockSpec((nb, 1, Cb), lambda i, j: (0, 0, j)),      # bs (col-streamed)
                    resident((nb, F3p, H2p), res3),                         # wc
                    resident((nb, 1, H2p), res3),                           # bc
                    resident((nb * H2p, in4p), res2),                       # w1 (fused)
                    resident((1, in4p), res2),                              # b1
                    resident((in4p, in8p), res2),                           # w2
                    resident((1, in8p), res2),                              # b2
                    resident((nb, in8p), res2),                             # w3^T
                ],
                out_specs=pl.BlockSpec((tn, Cb), lambda i, j: (i, j)),
                scratch_shapes=[pltpu.VMEM((nb, tn, 1), jnp.float32)],      # attention weights
            ),
            compiler_params=pltpu.CompilerParams(
                dimension_semantics=("parallel", "arbitrary"),
                vmem_limit_bytes=int(vmem_limit),
            ),
        )(b3, x, ws, bs, wc, bc, w1, b1, w2, b2, w3t)

    try:
        # Single-buffer the grid-invariant weights (halves their VMEM residency).
        out = run(pl.Buffered(1))
    except Exception:
        # Fallback for JAX versions that reject buffer_count=1 on pallas_call specs.
        out = run(None)

    return out[:N, :C].reshape(B, Ts, C)


# ---------------------------------------------------------------------------
# Pure-JAX reference: original PyTorch op order (branch head on full timeline,
# then fast->slow re-indexing of outputs), same bf16-in / f32-accumulate mixed
# precision as the kernel so the comparison is apples-to-apples.
# ---------------------------------------------------------------------------
def forward_ref(params, inputs, alphas):
    min_a, max_a = min(alphas), max(alphas)
    n = len(inputs)
    slow_scores, contexts = [], []
    for i in range(n):
        xs = list(inputs[i])
        if alphas[i] != 0.5:
            xs = [v[:, 12:] for v in xs]
        if i > 0:
            step = int(alphas[i] / min_a)
            idx = resample_indices(xs[0].shape[1], step, int(1.0 / alphas[i]), int(1.0 / min_a))
            idx = jnp.asarray(idx, jnp.int32)
            xs = [jnp.take(v, idx, axis=1) for v in xs]
        bp = params["branches"][i]
        x = jnp.concatenate(xs, axis=-1).astype(jnp.bfloat16)
        s = jnp.dot(x, bp["ws"].astype(jnp.bfloat16),
                    preferred_element_type=jnp.float32) + bp["bs"]
        c = jnp.tanh(jnp.dot(x, bp["wc"].astype(jnp.bfloat16),
                             preferred_element_type=jnp.float32) + bp["bc"])
        if i < n - 1:
            step = int(max_a / alphas[i])
            idx = resample_indices(s.shape[1], step, int(1.0 / max_a), int(1.0 / alphas[i]))
            idx = jnp.asarray(idx, jnp.int32)
            s_slow = jnp.take(s, idx, axis=1)
            c = jnp.take(c, idx, axis=1)
        else:
            s_slow = s[:, 3:]
            c = c[:, 3:]
        slow_scores.append(s_slow)
        contexts.append(c)

    context = jnp.concatenate(contexts, axis=2)
    B, Ts, D = context.shape
    ctx2 = context.reshape(-1, D).astype(jnp.bfloat16)
    mp = params["matt"]
    h1 = jnp.maximum(jnp.dot(ctx2, mp["w1"].astype(jnp.bfloat16),
                             preferred_element_type=jnp.float32) + mp["b1"], 0.0)
    h2 = jnp.maximum(jnp.dot(h1.astype(jnp.bfloat16), mp["w2"].astype(jnp.bfloat16),
                             preferred_element_type=jnp.float32) + mp["b2"], 0.0)
    logits = jnp.dot(h2, mp["w3"], precision=jax.lax.Precision.HIGHEST) + mp["b3"]
    a = jax.nn.softmax(logits, axis=1)
    C = slow_scores[0].shape[-1]
    sc = jnp.zeros((B * Ts, C), jnp.float32)
    for i in range(n):
        sc = sc + slow_scores[i].reshape(B * Ts, C) * a[:, i:i + 1]
    return sc.reshape(B, Ts, C)


# ---------------------------------------------------------------------------
# Deterministic parameter construction
# ---------------------------------------------------------------------------
def init_params(key, feat, hidden, num_classes, num_branches):
    in_size = 2 * num_branches * hidden
    keys = jax.random.split(key, 4 * num_branches + 6)
    ki = iter(keys)
    branches = []
    for _ in range(num_branches):
        branches.append(dict(
            ws=0.05 * jax.random.normal(next(ki), (3 * feat, num_classes), jnp.float32),
            bs=0.05 * jax.random.normal(next(ki), (num_classes,), jnp.float32),
            wc=0.05 * jax.random.normal(next(ki), (3 * feat, 2 * hidden), jnp.float32),
            bc=0.05 * jax.random.normal(next(ki), (2 * hidden,), jnp.float32),
        ))
    matt = dict(
        w1=0.05 * jax.random.normal(next(ki), (in_size, in_size // 4), jnp.float32),
        b1=0.05 * jax.random.normal(next(ki), (1, in_size // 4), jnp.float32),
        w2=0.05 * jax.random.normal(next(ki), (in_size // 4, in_size // 8), jnp.float32),
        b2=0.05 * jax.random.normal(next(ki), (1, in_size // 8), jnp.float32),
        w3=0.05 * jax.random.normal(next(ki), (in_size // 8, num_branches), jnp.float32),
        b3=0.05 * jax.random.normal(next(ki), (1, num_branches), jnp.float32),
    )
    return dict(branches=branches, matt=matt)


if __name__ == "__main__":
    key = jax.random.PRNGKey(0)
    B, T, feat = 2, 32, 16                   # per-branch input: 3 modalities of (B, T, feat)
    hidden, num_classes = 32, 8
    alphas = [0.125, 0.5]
    nb = len(alphas)

    kp, kx = jax.random.split(key)
    params = init_params(kp, feat, hidden, num_classes, nb)

    xkeys = jax.random.split(kx, 3 * nb)
    inputs = [[jax.random.normal(xkeys[3 * i + m], (B, T, feat), jnp.float32)
               for m in range(3)] for i in range(nb)]

    out = jax.block_until_ready(forward_pallas(params, inputs, alphas))
    ref = jax.block_until_ready(forward_ref(params, inputs, alphas))

    assert out.shape == (B, 5, num_classes)  # T_slow = 5 for T=32, alphas=[0.125,0.5]
    # Tolerance covers the approx EUP reciprocal in the softmax denominator and
    # f32 accumulation-order differences; both paths use identical bf16/f32 mixed precision.
    np.testing.assert_allclose(np.asarray(out), np.asarray(ref), rtol=2e-3, atol=2e-3)
    print("KERNEL_OK")
</pallas_src>

<mosaic_0001>
module attributes {stable_mosaic.version = 11 : i64} {
  func.func @_fused_kernel(%arg0: i32, %arg1: i32, %arg2: memref<2xf32, #tpu.memory_space<smem>>, %arg3: memref<2x16x128xbf16, #tpu.memory_space<vmem>>, %arg4: memref<2x128x128xbf16, #tpu.memory_space<vmem>>, %arg5: memref<2x1x128xf32, #tpu.memory_space<vmem>>, %arg6: memref<2x128x128xbf16, #tpu.memory_space<vmem>>, %arg7: memref<2x1x128xf32, #tpu.memory_space<vmem>>, %arg8: memref<256x128xbf16, #tpu.memory_space<vmem>>, %arg9: memref<1x128xf32, #tpu.memory_space<vmem>>, %arg10: memref<128x128xbf16, #tpu.memory_space<vmem>>, %arg11: memref<1x128xf32, #tpu.memory_space<vmem>>, %arg12: memref<2x128xf32, #tpu.memory_space<vmem>>, %arg13: memref<16x128xf32, #tpu.memory_space<vmem>>, %arg14: memref<2x16x1xf32, #tpu.memory_space<vmem>>) attributes {dimension_semantics = [#tpu.dimension_semantics<parallel>, #tpu.dimension_semantics<arbitrary>], iteration_bounds = array<i64: 1, 1>, scalar_prefetch = 0 : i64, scratch_operands = 1 : i64, tpu.core_type = #tpu.core_type<tc>, window_params = [{transform_indices = @transform_0, window_bounds = array<i64: 2>}, {transform_indices = @transform_1, window_bounds = array<i64: 2, 16, 128>}, {transform_indices = @transform_2, window_bounds = array<i64: 2, 128, 128>}, {transform_indices = @transform_3, window_bounds = array<i64: 2, 1, 128>}, {pipeline_mode = #tpu.pipeline_mode<synchronous>, transform_indices = @transform_4, window_bounds = array<i64: 2, 128, 128>}, {pipeline_mode = #tpu.pipeline_mode<synchronous>, transform_indices = @transform_5, window_bounds = array<i64: 2, 1, 128>}, {pipeline_mode = #tpu.pipeline_mode<synchronous>, transform_indices = @transform_6, window_bounds = array<i64: 256, 128>}, {pipeline_mode = #tpu.pipeline_mode<synchronous>, transform_indices = @transform_7, window_bounds = array<i64: 1, 128>}, {pipeline_mode = #tpu.pipeline_mode<synchronous>, transform_indices = @transform_8, window_bounds = array<i64: 128, 128>}, {pipeline_mode = #tpu.pipeline_mode<synchronous>, transform_indices = @transform_9, window_bounds = array<i64: 1, 128>}, {pipeline_mode = #tpu.pipeline_mode<synchronous>, transform_indices = @transform_10, window_bounds = array<i64: 2, 128>}, {transform_indices = @transform_11, window_bounds = array<i64: 16, 128>}]} {
    %c0_i32 = arith.constant 0 : i32
    %0 = arith.cmpi eq, %arg1, %c0_i32 : i32
    %1 = arith.extui %0 : i1 to i32
    %c0_i32_0 = arith.constant 0 : i32
    %2 = arith.cmpi ne, %1, %c0_i32_0 : i32
    scf.if %2 {
      %c0_26 = arith.constant 0 : index
      %c0_27 = arith.constant 0 : index
      %c0_28 = arith.constant 0 : index
      %31 = vector.load %arg3[%c0_26, %c0_27, %c0_28] : memref<2x16x128xbf16, #tpu.memory_space<vmem>>, vector<1x16x128xbf16>
      %32 = vector.shape_cast %31 : vector<1x16x128xbf16> to vector<16x128xbf16>
      %c0_29 = arith.constant 0 : index
      %c0_30 = arith.constant 0 : index
      %c0_31 = arith.constant 0 : index
      %33 = vector.load %arg6[%c0_29, %c0_30, %c0_31] : memref<2x128x128xbf16, #tpu.memory_space<vmem>>, vector<1x128x128xbf16>
      %34 = vector.shape_cast %33 : vector<1x128x128xbf16> to vector<128x128xbf16>
      %cst_32 = arith.constant dense<0.000000e+00> : vector<16x128xf32>
      %35 = tpu.matmul %32, %34, %cst_32 {dimension_numbers = #tpu.dot_dimension_numbers<[1], [0], [0], [1], [0, 0, 1, 1], [], []>} : vector<16x128xbf16>, vector<128x128xbf16>, vector<16x128xf32> -> vector<16x128xf32>
      %c0_33 = arith.constant 0 : index
      %c0_34 = arith.constant 0 : index
      %c0_35 = arith.constant 0 : index
      %36 = vector.load %arg7[%c0_33, %c0_34, %c0_35] : memref<2x1x128xf32, #tpu.memory_space<vmem>>, vector<1x1x128xf32>
      %37 = vector.shape_cast %36 : vector<1x1x128xf32> to vector<1x128xf32>
      %38 = vector.broadcast %37 : vector<1x128xf32> to vector<16x128xf32>
      %39 = arith.addf %35, %38 : vector<16x128xf32>
      %40 = math.tanh %39 : vector<16x128xf32>
      %41 = arith.truncf %40 : vector<16x128xf32> to vector<16x128xbf16>
      %c1_36 = arith.constant 1 : index
      %c0_37 = arith.constant 0 : index
      %c0_38 = arith.constant 0 : index
      %42 = vector.load %arg3[%c1_36, %c0_37, %c0_38] : memref<2x16x128xbf16, #tpu.memory_space<vmem>>, vector<1x16x128xbf16>
      %43 = vector.shape_cast %42 : vector<1x16x128xbf16> to vector<16x128xbf16>
      %c1_39 = arith.constant 1 : index
      %c0_40 = arith.constant 0 : index
      %c0_41 = arith.constant 0 : index
      %44 = vector.load %arg6[%c1_39, %c0_40, %c0_41] : memref<2x128x128xbf16, #tpu.memory_space<vmem>>, vector<1x128x128xbf16>
      %45 = vector.shape_cast %44 : vector<1x128x128xbf16> to vector<128x128xbf16>
      %cst_42 = arith.constant dense<0.000000e+00> : vector<16x128xf32>
      %46 = tpu.matmul %43, %45, %cst_42 {dimension_numbers = #tpu.dot_dimension_numbers<[1], [0], [0], [1], [0, 0, 1, 1], [], []>} : vector<16x128xbf16>, vector<128x128xbf16>, vector<16x128xf32> -> vector<16x128xf32>
      %c1_43 = arith.constant 1 : index
      %c0_44 = arith.constant 0 : index
      %c0_45 = arith.constant 0 : index
      %47 = vector.load %arg7[%c1_43, %c0_44, %c0_45] : memref<2x1x128xf32, #tpu.memory_space<vmem>>, vector<1x1x128xf32>
      %48 = vector.shape_cast %47 : vector<1x1x128xf32> to vector<1x128xf32>
      %49 = vector.broadcast %48 : vector<1x128xf32> to vector<16x128xf32>
      %50 = arith.addf %46, %49 : vector<16x128xf32>
      %51 = math.tanh %50 : vector<16x128xf32>
      %52 = arith.truncf %51 : vector<16x128xf32> to vector<16x128xbf16>
      %53 = tpu.concatenate %41, %52 in 1 : vector<16x128xbf16>, vector<16x128xbf16> -> vector<16x256xbf16>
      %c0_46 = arith.constant 0 : index
      %c0_47 = arith.constant 0 : index
      %54 = vector.load %arg8[%c0_46, %c0_47] : memref<256x128xbf16, #tpu.memory_space<vmem>>, vector<256x128xbf16>
      %cst_48 = arith.constant dense<0.000000e+00> : vector<16x128xf32>
      %55 = tpu.matmul %53, %54, %cst_48 {dimension_numbers = #tpu.dot_dimension_numbers<[1], [0], [0], [1], [0, 0, 1, 1], [], []>} : vector<16x256xbf16>, vector<256x128xbf16>, vector<16x128xf32> -> vector<16x128xf32>
      %c0_49 = arith.constant 0 : index
      %c0_50 = arith.constant 0 : index
      %56 = vector.load %arg9[%c0_49, %c0_50] : memref<1x128xf32, #tpu.memory_space<vmem>>, vector<1x128xf32>
      %57 = vector.broadcast %56 : vector<1x128xf32> to vector<16x128xf32>
      %58 = arith.addf %55, %57 : vector<16x128xf32>
      %cst_51 = arith.constant 0.000000e+00 : f32
      %59 = vector.broadcast %cst_51 : f32 to vector<16x128xf32>
      %60 = arith.maximumf %58, %59 : vector<16x128xf32>
      %61 = arith.truncf %60 : vector<16x128xf32> to vector<16x128xbf16>
      %c0_52 = arith.constant 0 : index
      %c0_53 = arith.constant 0 : index
      %62 = vector.load %arg10[%c0_52, %c0_53] : memref<128x128xbf16, #tpu.memory_space<vmem>>, vector<128x128xbf16>
      %cst_54 = arith.constant dense<0.000000e+00> : vector<16x128xf32>
      %63 = tpu.matmul %61, %62, %cst_54 {dimension_numbers = #tpu.dot_dimension_numbers<[1], [0], [0], [1], [0, 0, 1, 1], [], []>} : vector<16x128xbf16>, vector<128x128xbf16>, vector<16x128xf32> -> vector<16x128xf32>
      %c0_55 = arith.constant 0 : index
      %c0_56 = arith.constant 0 : index
      %64 = vector.load %arg11[%c0_55, %c0_56] : memref<1x128xf32, #tpu.memory_space<vmem>>, vector<1x128xf32>
      %65 = vector.broadcast %64 : vector<1x128xf32> to vector<16x128xf32>
      %66 = arith.addf %63, %65 : vector<16x128xf32>
      %cst_57 = arith.constant 0.000000e+00 : f32
      %67 = vector.broadcast %cst_57 : f32 to vector<16x128xf32>
      %68 = arith.maximumf %66, %67 : vector<16x128xf32>
      %c0_58 = arith.constant 0 : index
      %c0_59 = arith.constant 0 : index
      %69 = vector.load %arg12[%c0_58, %c0_59] : memref<2x128xf32, #tpu.memory_space<vmem>>, vector<2x128xf32>
      %70 = vector.extract_strided_slice %69 {offsets = [0, 0], sizes = [1, 128], strides = [1, 1]} : vector<2x128xf32> to vector<1x128xf32>
      %71 = vector.broadcast %70 : vector<1x128xf32> to vector<16x128xf32>
      %72 = arith.mulf %68, %71 : vector<16x128xf32>
      %cst_60 = arith.constant dense<0.000000e+00> : vector<16xf32>
      %73 = vector.multi_reduction <add>, %72, %cst_60 [1] : vector<16x128xf32> to vector<16xf32>
      %74 = vector.shape_cast %73 : vector<16xf32> to vector<16x1xf32>
      %c0_61 = arith.constant 0 : index
      %75 = memref.load %arg2[%c0_61] : memref<2xf32, #tpu.memory_space<smem>>
      %76 = vector.broadcast %75 : f32 to vector<16x1xf32>
      %77 = arith.addf %74, %76 : vector<16x1xf32>
      %78 = vector.extract_strided_slice %69 {offsets = [1, 0], sizes = [1, 128], strides = [1, 1]} : vector<2x128xf32> to vector<1x128xf32>
      %79 = vector.broadcast %78 : vector<1x128xf32> to vector<16x128xf32>
      %80 = arith.mulf %68, %79 : vector<16x128xf32>
      %cst_62 = arith.constant dense<0.000000e+00> : vector<16xf32>
      %81 = vector.multi_reduction <add>, %80, %cst_62 [1] : vector<16x128xf32> to vector<16xf32>
      %82 = vector.shape_cast %81 : vector<16xf32> to vector<16x1xf32>
      %c1_63 = arith.constant 1 : index
      %83 = memref.load %arg2[%c1_63] : memref<2xf32, #tpu.memory_space<smem>>
      %84 = vector.broadcast %83 : f32 to vector<16x1xf32>
      %85 = arith.addf %82, %84 : vector<16x1xf32>
      %86 = arith.maximumf %77, %85 : vector<16x1xf32>
      %87 = arith.subf %77, %86 : vector<16x1xf32>
      %88 = math.exp %87 : vector<16x1xf32>
      %89 = arith.subf %85, %86 : vector<16x1xf32>
      %90 = math.exp %89 : vector<16x1xf32>
      %91 = arith.addf %88, %90 : vector<16x1xf32>
      %92 = tpu.reciprocal %91 {approx = true} : vector<16x1xf32> -> vector<16x1xf32>
      %93 = arith.mulf %88, %92 : vector<16x1xf32>
      %c0_64 = arith.constant 0 : index
      %c0_65 = arith.constant 0 : index
      %c0_66 = arith.constant 0 : index
      %94 = vector.load %arg14[%c0_64, %c0_65, %c0_66] : memref<2x16x1xf32, #tpu.memory_space<vmem>>, vector<1x16x1xf32>
      %95 = vector.shape_cast %94 : vector<1x16x1xf32> to vector<16x1xf32>
      %96 = vector.shape_cast %93 : vector<16x1xf32> to vector<1x16x1xf32>
      tpu.vector_store %arg14[%c0_64, %c0_65, %c0_66], %96 {strides = array<i32>} : memref<2x16x1xf32, #tpu.memory_space<vmem>>, vector<1x16x1xf32>,
      %97 = arith.mulf %90, %92 : vector<16x1xf32>
      %c1_67 = arith.constant 1 : index
      %c0_68 = arith.constant 0 : index
      %c0_69 = arith.constant 0 : index
      %98 = vector.load %arg14[%c1_67, %c0_68, %c0_69] : memref<2x16x1xf32, #tpu.memory_space<vmem>>, vector<1x16x1xf32>
      %99 = vector.shape_cast %98 : vector<1x16x1xf32> to vector<16x1xf32>
      %100 = vector.shape_cast %97 : vector<16x1xf32> to vector<1x16x1xf32>
      tpu.vector_store %arg14[%c1_67, %c0_68, %c0_69], %100 {strides = array<i32>} : memref<2x16x1xf32, #tpu.memory_space<vmem>>, vector<1x16x1xf32>,
    } else {
    }
    %c0 = arith.constant 0 : index
    %c0_1 = arith.constant 0 : index
    %c0_2 = arith.constant 0 : index
    %3 = vector.load %arg14[%c0, %c0_1, %c0_2] : memref<2x16x1xf32, #tpu.memory_space<vmem>>, vector<1x16x1xf32>
    %4 = vector.shape_cast %3 : vector<1x16x1xf32> to vector<16x1xf32>
    %c0_3 = arith.constant 0 : index
    %c0_4 = arith.constant 0 : index
    %c0_5 = arith.constant 0 : index
    %5 = vector.load %arg3[%c0_3, %c0_4, %c0_5] : memref<2x16x128xbf16, #tpu.memory_space<vmem>>, vector<1x16x128xbf16>
    %6 = vector.shape_cast %5 : vector<1x16x128xbf16> to vector<16x128xbf16>
    %c0_6 = arith.constant 0 : index
    %c0_7 = arith.constant 0 : index
    %c0_8 = arith.constant 0 : index
    %7 = vector.load %arg4[%c0_6, %c0_7, %c0_8] : memref<2x128x128xbf16, #tpu.memory_space<vmem>>, vector<1x128x128xbf16>
    %8 = vector.shape_cast %7 : vector<1x128x128xbf16> to vector<128x128xbf16>
    %cst = arith.constant dense<0.000000e+00> : vector<16x128xf32>
    %9 = tpu.matmul %6, %8, %cst {dimension_numbers = #tpu.dot_dimension_numbers<[1], [0], [0], [1], [0, 0, 1, 1], [], []>} : vector<16x128xbf16>, vector<128x128xbf16>, vector<16x128xf32> -> vector<16x128xf32>
    %c0_9 = arith.constant 0 : index
    %c0_10 = arith.constant 0 : index
    %c0_11 = arith.constant 0 : index
    %10 = vector.load %arg5[%c0_9, %c0_10, %c0_11] : memref<2x1x128xf32, #tpu.memory_space<vmem>>, vector<1x1x128xf32>
    %11 = vector.shape_cast %10 : vector<1x1x128xf32> to vector<1x128xf32>
    %12 = vector.broadcast %11 : vector<1x128xf32> to vector<16x128xf32>
    %13 = arith.addf %9, %12 : vector<16x128xf32>
    %14 = vector.broadcast %4 : vector<16x1xf32> to vector<16x128xf32>
    %15 = arith.mulf %14, %13 : vector<16x128xf32>
    %c1 = arith.constant 1 : index
    %c0_12 = arith.constant 0 : index
    %c0_13 = arith.constant 0 : index
    %16 = vector.load %arg14[%c1, %c0_12, %c0_13] : memref<2x16x1xf32, #tpu.memory_space<vmem>>, vector<1x16x1xf32>
    %17 = vector.shape_cast %16 : vector<1x16x1xf32> to vector<16x1xf32>
    %c1_14 = arith.constant 1 : index
    %c0_15 = arith.constant 0 : index
    %c0_16 = arith.constant 0 : index
    %18 = vector.load %arg3[%c1_14, %c0_15, %c0_16] : memref<2x16x128xbf16, #tpu.memory_space<vmem>>, vector<1x16x128xbf16>
    %19 = vector.shape_cast %18 : vector<1x16x128xbf16> to vector<16x128xbf16>
    %c1_17 = arith.constant 1 : index
    %c0_18 = arith.constant 0 : index
    %c0_19 = arith.constant 0 : index
    %20 = vector.load %arg4[%c1_17, %c0_18, %c0_19] : memref<2x128x128xbf16, #tpu.memory_space<vmem>>, vector<1x128x128xbf16>
    %21 = vector.shape_cast %20 : vector<1x128x128xbf16> to vector<128x128xbf16>
    %cst_20 = arith.constant dense<0.000000e+00> : vector<16x128xf32>
    %22 = tpu.matmul %19, %21, %cst_20 {dimension_numbers = #tpu.dot_dimension_numbers<[1], [0], [0], [1], [0, 0, 1, 1], [], []>} : vector<16x128xbf16>, vector<128x128xbf16>, vector<16x128xf32> -> vector<16x128xf32>
    %c1_21 = arith.constant 1 : index
    %c0_22 = arith.constant 0 : index
    %c0_23 = arith.constant 0 : index
    %23 = vector.load %arg5[%c1_21, %c0_22, %c0_23] : memref<2x1x128xf32, #tpu.memory_space<vmem>>, vector<1x1x128xf32>
    %24 = vector.shape_cast %23 : vector<1x1x128xf32> to vector<1x128xf32>
    %25 = vector.broadcast %24 : vector<1x128xf32> to vector<16x128xf32>
    %26 = arith.addf %22, %25 : vector<16x128xf32>
    %27 = vector.broadcast %17 : vector<16x1xf32> to vector<16x128xf32>
    %28 = arith.mulf %27, %26 : vector<16x128xf32>
    %29 = arith.addf %15, %28 : vector<16x128xf32>
    %c0_24 = arith.constant 0 : index
    %c0_25 = arith.constant 0 : index
    %30 = vector.load %arg13[%c0_24, %c0_25] : memref<16x128xf32, #tpu.memory_space<vmem>>, vector<16x128xf32>
    tpu.vector_store %arg13[%c0_24, %c0_25], %29 {strides = array<i32>} : memref<16x128xf32, #tpu.memory_space<vmem>>, vector<16x128xf32>,
    return
  }
  func.func @transform_0(%arg0: i32, %arg1: i32) -> i32 {
    %c0_i32 = arith.constant 0 : i32
    %c0_i32_0 = arith.constant 0 : i32
    return %c0_i32 : i32
  }
  func.func @transform_1(%arg0: i32, %arg1: i32) -> (i32, i32, i32) {
    %c0_i32 = arith.constant 0 : i32
    %c0_i32_0 = arith.constant 0 : i32
    %c0_i32_1 = arith.constant 0 : i32
    return %c0_i32, %arg0, %c0_i32_0 : i32, i32, i32
  }
  func.func @transform_2(%arg0: i32, %arg1: i32) -> (i32, i32, i32) {
    %c0_i32 = arith.constant 0 : i32
    %c0_i32_0 = arith.constant 0 : i32
    %c0_i32_1 = arith.constant 0 : i32
    return %c0_i32, %c0_i32_0, %arg1 : i32, i32, i32
  }
  func.func @transform_3(%arg0: i32, %arg1: i32) -> (i32, i32, i32) {
    %c0_i32 = arith.constant 0 : i32
    %c0_i32_0 = arith.constant 0 : i32
    %c0_i32_1 = arith.constant 0 : i32
    return %c0_i32, %c0_i32_0, %arg1 : i32, i32, i32
  }
  func.func @transform_4(%arg0: i32, %arg1: i32) -> (i32, i32, i32) {
    %c0_i32 = arith.constant 0 : i32
    %c0_i32_0 = arith.constant 0 : i32
    %c0_i32_1 = arith.constant 0 : i32
    %c0_i32_2 = arith.constant 0 : i32
    return %c0_i32, %c0_i32_0, %c0_i32_1 : i32, i32, i32
  }
  func.func @transform_5(%arg0: i32, %arg1: i32) -> (i32, i32, i32) {
    %c0_i32 = arith.constant 0 : i32
    %c0_i32_0 = arith.constant 0 : i32
    %c0_i32_1 = arith.constant 0 : i32
    %c0_i32_2 = arith.constant 0 : i32
    return %c0_i32, %c0_i32_0, %c0_i32_1 : i32, i32, i32
  }
  func.func @transform_6(%arg0: i32, %arg1: i32) -> (i32, i32) {
    %c0_i32 = arith.constant 0 : i32
    %c0_i32_0 = arith.constant 0 : i32
    %c0_i32_1 = arith.constant 0 : i32
    return %c0_i32, %c0_i32_0 : i32, i32
  }
  func.func @transform_7(%arg0: i32, %arg1: i32) -> (i32, i32) {
    %c0_i32 = arith.constant 0 : i32
    %c0_i32_0 = arith.constant 0 : i32
    %c0_i32_1 = arith.constant 0 : i32
    return %c0_i32, %c0_i32_0 : i32, i32
  }
  func.func @transform_8(%arg0: i32, %arg1: i32) -> (i32, i32) {
    %c0_i32 = arith.constant 0 : i32
    %c0_i32_0 = arith.constant 0 : i32
    %c0_i32_1 = arith.constant 0 : i32
    return %c0_i32, %c0_i32_0 : i32, i32
  }
  func.func @transform_9(%arg0: i32, %arg1: i32) -> (i32, i32) {
    %c0_i32 = arith.constant 0 : i32
    %c0_i32_0 = arith.constant 0 : i32
    %c0_i32_1 = arith.constant 0 : i32
    return %c0_i32, %c0_i32_0 : i32, i32
  }
  func.func @transform_10(%arg0: i32, %arg1: i32) -> (i32, i32) {
    %c0_i32 = arith.constant 0 : i32
    %c0_i32_0 = arith.constant 0 : i32
    %c0_i32_1 = arith.constant 0 : i32
    return %c0_i32, %c0_i32_0 : i32, i32
  }
  func.func @transform_11(%arg0: i32, %arg1: i32) -> (i32, i32) {
    %c0_i32 = arith.constant 0 : i32
    return %arg0, %arg1 : i32, i32
  }
}

module attributes {stable_mosaic.version = 11 : i64} {
  func.func @_fused_kernel(%arg0: i32, %arg1: i32, %arg2: memref<2xf32, #tpu.memory_space<smem>>, %arg3: memref<2x16x128xbf16, #tpu.memory_space<vmem>>, %arg4: memref<2x128x128xbf16, #tpu.memory_space<vmem>>, %arg5: memref<2x1x128xf32, #tpu.memory_space<vmem>>, %arg6: memref<2x128x128xbf16, #tpu.memory_space<vmem>>, %arg7: memref<2x1x128xf32, #tpu.memory_space<vmem>>, %arg8: memref<256x128xbf16, #tpu.memory_space<vmem>>, %arg9: memref<1x128xf32, #tpu.memory_space<vmem>>, %arg10: memref<128x128xbf16, #tpu.memory_space<vmem>>, %arg11: memref<1x128xf32, #tpu.memory_space<vmem>>, %arg12: memref<2x128xf32, #tpu.memory_space<vmem>>, %arg13: memref<16x128xf32, #tpu.memory_space<vmem>>, %arg14: memref<2x16x1xf32, #tpu.memory_space<vmem>>) attributes {dimension_semantics = [#tpu.dimension_semantics<parallel>, #tpu.dimension_semantics<arbitrary>], iteration_bounds = array<i64: 1, 1>, scalar_prefetch = 0 : i64, scratch_operands = 1 : i64, tpu.core_type = #tpu.core_type<tc>, window_params = [{transform_indices = @transform_0, window_bounds = array<i64: 2>}, {transform_indices = @transform_1, window_bounds = array<i64: 2, 16, 128>}, {transform_indices = @transform_2, window_bounds = array<i64: 2, 128, 128>}, {transform_indices = @transform_3, window_bounds = array<i64: 2, 1, 128>}, {pipeline_mode = #tpu.pipeline_mode<synchronous>, transform_indices = @transform_4, window_bounds = array<i64: 2, 128, 128>}, {pipeline_mode = #tpu.pipeline_mode<synchronous>, transform_indices = @transform_5, window_bounds = array<i64: 2, 1, 128>}, {pipeline_mode = #tpu.pipeline_mode<synchronous>, transform_indices = @transform_6, window_bounds = array<i64: 256, 128>}, {pipeline_mode = #tpu.pipeline_mode<synchronous>, transform_indices = @transform_7, window_bounds = array<i64: 1, 128>}, {pipeline_mode = #tpu.pipeline_mode<synchronous>, transform_indices = @transform_8, window_bounds = array<i64: 128, 128>}, {pipeline_mode = #tpu.pipeline_mode<synchronous>, transform_indices = @transform_9, window_bounds = array<i64: 1, 128>}, {pipeline_mode = #tpu.pipeline_mode<synchronous>, transform_indices = @transform_10, window_bounds = array<i64: 2, 128>}, {transform_indices = @transform_11, window_bounds = array<i64: 16, 128>}]} {
    %c0_i32 = arith.constant 0 : i32
    %0 = arith.cmpi eq, %arg1, %c0_i32 : i32
    %1 = arith.extui %0 : i1 to i32
    %c0_i32_0 = arith.constant 0 : i32
    %2 = arith.cmpi ne, %1, %c0_i32_0 : i32
    scf.if %2 {
      %c0_26 = arith.constant 0 : index
      %c0_27 = arith.constant 0 : index
      %c0_28 = arith.constant 0 : index
      %31 = vector.load %arg3[%c0_26, %c0_27, %c0_28] : memref<2x16x128xbf16, #tpu.memory_space<vmem>>, vector<1x16x128xbf16>
      %32 = vector.shape_cast %31 : vector<1x16x128xbf16> to vector<16x128xbf16>
      %c0_29 = arith.constant 0 : index
      %c0_30 = arith.constant 0 : index
      %c0_31 = arith.constant 0 : index
      %33 = vector.load %arg6[%c0_29, %c0_30, %c0_31] : memref<2x128x128xbf16, #tpu.memory_space<vmem>>, vector<1x128x128xbf16>
      %34 = vector.shape_cast %33 : vector<1x128x128xbf16> to vector<128x128xbf16>
      %cst_32 = arith.constant dense<0.000000e+00> : vector<16x128xf32>
      %35 = tpu.matmul %32, %34, %cst_32 {dimension_numbers = #tpu.dot_dimension_numbers<[1], [0], [0], [1], [0, 0, 1, 1], [], []>} : vector<16x128xbf16>, vector<128x128xbf16>, vector<16x128xf32> -> vector<16x128xf32>
      %c0_33 = arith.constant 0 : index
      %c0_34 = arith.constant 0 : index
      %c0_35 = arith.constant 0 : index
      %36 = vector.load %arg7[%c0_33, %c0_34, %c0_35] : memref<2x1x128xf32, #tpu.memory_space<vmem>>, vector<1x1x128xf32>
      %37 = vector.shape_cast %36 : vector<1x1x128xf32> to vector<1x128xf32>
      %38 = vector.broadcast %37 : vector<1x128xf32> to vector<16x128xf32>
      %39 = arith.addf %35, %38 : vector<16x128xf32>
      %40 = math.tanh %39 : vector<16x128xf32>
      %41 = arith.truncf %40 : vector<16x128xf32> to vector<16x128xbf16>
      %c1_36 = arith.constant 1 : index
      %c0_37 = arith.constant 0 : index
      %c0_38 = arith.constant 0 : index
      %42 = vector.load %arg3[%c1_36, %c0_37, %c0_38] : memref<2x16x128xbf16, #tpu.memory_space<vmem>>, vector<1x16x128xbf16>
      %43 = vector.shape_cast %42 : vector<1x16x128xbf16> to vector<16x128xbf16>
      %c1_39 = arith.constant 1 : index
      %c0_40 = arith.constant 0 : index
      %c0_41 = arith.constant 0 : index
      %44 = vector.load %arg6[%c1_39, %c0_40, %c0_41] : memref<2x128x128xbf16, #tpu.memory_space<vmem>>, vector<1x128x128xbf16>
      %45 = vector.shape_cast %44 : vector<1x128x128xbf16> to vector<128x128xbf16>
      %cst_42 = arith.constant dense<0.000000e+00> : vector<16x128xf32>
      %46 = tpu.matmul %43, %45, %cst_42 {dimension_numbers = #tpu.dot_dimension_numbers<[1], [0], [0], [1], [0, 0, 1, 1], [], []>} : vector<16x128xbf16>, vector<128x128xbf16>, vector<16x128xf32> -> vector<16x128xf32>
      %c1_43 = arith.constant 1 : index
      %c0_44 = arith.constant 0 : index
      %c0_45 = arith.constant 0 : index
      %47 = vector.load %arg7[%c1_43, %c0_44, %c0_45] : memref<2x1x128xf32, #tpu.memory_space<vmem>>, vector<1x1x128xf32>
      %48 = vector.shape_cast %47 : vector<1x1x128xf32> to vector<1x128xf32>
      %49 = vector.broadcast %48 : vector<1x128xf32> to vector<16x128xf32>
      %50 = arith.addf %46, %49 : vector<16x128xf32>
      %51 = math.tanh %50 : vector<16x128xf32>
      %52 = arith.truncf %51 : vector<16x128xf32> to vector<16x128xbf16>
      %53 = tpu.concatenate %41, %52 in 1 : vector<16x128xbf16>, vector<16x128xbf16> -> vector<16x256xbf16>
      %c0_46 = arith.constant 0 : index
      %c0_47 = arith.constant 0 : index
      %54 = vector.load %arg8[%c0_46, %c0_47] : memref<256x128xbf16, #tpu.memory_space<vmem>>, vector<256x128xbf16>
      %cst_48 = arith.constant dense<0.000000e+00> : vector<16x128xf32>
      %55 = tpu.matmul %53, %54, %cst_48 {dimension_numbers = #tpu.dot_dimension_numbers<[1], [0], [0], [1], [0, 0, 1, 1], [], []>} : vector<16x256xbf16>, vector<256x128xbf16>, vector<16x128xf32> -> vector<16x128xf32>
      %c0_49 = arith.constant 0 : index
      %c0_50 = arith.constant 0 : index
      %56 = vector.load %arg9[%c0_49, %c0_50] : memref<1x128xf32, #tpu.memory_space<vmem>>, vector<1x128xf32>
      %57 = vector.broadcast %56 : vector<1x128xf32> to vector<16x128xf32>
      %58 = arith.addf %55, %57 : vector<16x128xf32>
      %cst_51 = arith.constant 0.000000e+00 : f32
      %59 = vector.broadcast %cst_51 : f32 to vector<16x128xf32>
      %60 = arith.maximumf %58, %59 : vector<16x128xf32>
      %61 = arith.truncf %60 : vector<16x128xf32> to vector<16x128xbf16>
      %c0_52 = arith.constant 0 : index
      %c0_53 = arith.constant 0 : index
      %62 = vector.load %arg10[%c0_52, %c0_53] : memref<128x128xbf16, #tpu.memory_space<vmem>>, vector<128x128xbf16>
      %cst_54 = arith.constant dense<0.000000e+00> : vector<16x128xf32>
      %63 = tpu.matmul %61, %62, %cst_54 {dimension_numbers = #tpu.dot_dimension_numbers<[1], [0], [0], [1], [0, 0, 1, 1], [], []>} : vector<16x128xbf16>, vector<128x128xbf16>, vector<16x128xf32> -> vector<16x128xf32>
      %c0_55 = arith.constant 0 : index
      %c0_56 = arith.constant 0 : index
      %64 = vector.load %arg11[%c0_55, %c0_56] : memref<1x128xf32, #tpu.memory_space<vmem>>, vector<1x128xf32>
      %65 = vector.broadcast %64 : vector<1x128xf32> to vector<16x128xf32>
      %66 = arith.addf %63, %65 : vector<16x128xf32>
      %cst_57 = arith.constant 0.000000e+00 : f32
      %67 = vector.broadcast %cst_57 : f32 to vector<16x128xf32>
      %68 = arith.maximumf %66, %67 : vector<16x128xf32>
      %c0_58 = arith.constant 0 : index
      %c0_59 = arith.constant 0 : index
      %69 = vector.load %arg12[%c0_58, %c0_59] : memref<2x128xf32, #tpu.memory_space<vmem>>, vector<2x128xf32>
      %70 = vector.extract_strided_slice %69 {offsets = [0, 0], sizes = [1, 128], strides = [1, 1]} : vector<2x128xf32> to vector<1x128xf32>
      %71 = vector.broadcast %70 : vector<1x128xf32> to vector<16x128xf32>
      %72 = arith.mulf %68, %71 : vector<16x128xf32>
      %cst_60 = arith.constant dense<0.000000e+00> : vector<16xf32>
      %73 = vector.multi_reduction <add>, %72, %cst_60 [1] : vector<16x128xf32> to vector<16xf32>
      %74 = vector.shape_cast %73 : vector<16xf32> to vector<16x1xf32>
      %c0_61 = arith.constant 0 : index
      %75 = memref.load %arg2[%c0_61] : memref<2xf32, #tpu.memory_space<smem>>
      %76 = vector.broadcast %75 : f32 to vector<16x1xf32>
      %77 = arith.addf %74, %76 : vector<16x1xf32>
      %78 = vector.extract_strided_slice %69 {offsets = [1, 0], sizes = [1, 128], strides = [1, 1]} : vector<2x128xf32> to vector<1x128xf32>
      %79 = vector.broadcast %78 : vector<1x128xf32> to vector<16x128xf32>
      %80 = arith.mulf %68, %79 : vector<16x128xf32>
      %cst_62 = arith.constant dense<0.000000e+00> : vector<16xf32>
      %81 = vector.multi_reduction <add>, %80, %cst_62 [1] : vector<16x128xf32> to vector<16xf32>
      %82 = vector.shape_cast %81 : vector<16xf32> to vector<16x1xf32>
      %c1_63 = arith.constant 1 : index
      %83 = memref.load %arg2[%c1_63] : memref<2xf32, #tpu.memory_space<smem>>
      %84 = vector.broadcast %83 : f32 to vector<16x1xf32>
      %85 = arith.addf %82, %84 : vector<16x1xf32>
      %86 = arith.maximumf %77, %85 : vector<16x1xf32>
      %87 = arith.subf %77, %86 : vector<16x1xf32>
      %88 = math.exp %87 : vector<16x1xf32>
      %89 = arith.subf %85, %86 : vector<16x1xf32>
      %90 = math.exp %89 : vector<16x1xf32>
      %91 = arith.addf %88, %90 : vector<16x1xf32>
      %92 = tpu.reciprocal %91 {approx = true} : vector<16x1xf32> -> vector<16x1xf32>
      %93 = arith.mulf %88, %92 : vector<16x1xf32>
      %c0_64 = arith.constant 0 : index
      %c0_65 = arith.constant 0 : index
      %c0_66 = arith.constant 0 : index
      %94 = vector.load %arg14[%c0_64, %c0_65, %c0_66] : memref<2x16x1xf32, #tpu.memory_space<vmem>>, vector<1x16x1xf32>
      %95 = vector.shape_cast %94 : vector<1x16x1xf32> to vector<16x1xf32>
      %96 = vector.shape_cast %93 : vector<16x1xf32> to vector<1x16x1xf32>
      tpu.vector_store %arg14[%c0_64, %c0_65, %c0_66], %96 {strides = array<i32>} : memref<2x16x1xf32, #tpu.memory_space<vmem>>, vector<1x16x1xf32>,
      %97 = arith.mulf %90, %92 : vector<16x1xf32>
      %c1_67 = arith.constant 1 : index
      %c0_68 = arith.constant 0 : index
      %c0_69 = arith.constant 0 : index
      %98 = vector.load %arg14[%c1_67, %c0_68, %c0_69] : memref<2x16x1xf32, #tpu.memory_space<vmem>>, vector<1x16x1xf32>
      %99 = vector.shape_cast %98 : vector<1x16x1xf32> to vector<16x1xf32>
      %100 = vector.shape_cast %97 : vector<16x1xf32> to vector<1x16x1xf32>
      tpu.vector_store %arg14[%c1_67, %c0_68, %c0_69], %100 {strides = array<i32>} : memref<2x16x1xf32, #tpu.memory_space<vmem>>, vector<1x16x1xf32>,
    } else {
    }
    %c0 = arith.constant 0 : index
    %c0_1 = arith.constant 0 : index
    %c0_2 = arith.constant 0 : index
    %3 = vector.load %arg14[%c0, %c0_1, %c0_2] : memref<2x16x1xf32, #tpu.memory_space<vmem>>, vector<1x16x1xf32>
    %4 = vector.shape_cast %3 : vector<1x16x1xf32> to vector<16x1xf32>
    %c0_3 = arith.constant 0 : index
    %c0_4 = arith.constant 0 : index
    %c0_5 = arith.constant 0 : index
    %5 = vector.load %arg3[%c0_3, %c0_4, %c0_5] : memref<2x16x128xbf16, #tpu.memory_space<vmem>>, vector<1x16x128xbf16>
    %6 = vector.shape_cast %5 : vector<1x16x128xbf16> to vector<16x128xbf16>
    %c0_6 = arith.constant 0 : index
    %c0_7 = arith.constant 0 : index
    %c0_8 = arith.constant 0 : index
    %7 = vector.load %arg4[%c0_6, %c0_7, %c0_8] : memref<2x128x128xbf16, #tpu.memory_space<vmem>>, vector<1x128x128xbf16>
    %8 = vector.shape_cast %7 : vector<1x128x128xbf16> to vector<128x128xbf16>
    %cst = arith.constant dense<0.000000e+00> : vector<16x128xf32>
    %9 = tpu.matmul %6, %8, %cst {dimension_numbers = #tpu.dot_dimension_numbers<[1], [0], [0], [1], [0, 0, 1, 1], [], []>} : vector<16x128xbf16>, vector<128x128xbf16>, vector<16x128xf32> -> vector<16x128xf32>
    %c0_9 = arith.constant 0 : index
    %c0_10 = arith.constant 0 : index
    %c0_11 = arith.constant 0 : index
    %10 = vector.load %arg5[%c0_9, %c0_10, %c0_11] : memref<2x1x128xf32, #tpu.memory_space<vmem>>, vector<1x1x128xf32>
    %11 = vector.shape_cast %10 : vector<1x1x128xf32> to vector<1x128xf32>
    %12 = vector.broadcast %11 : vector<1x128xf32> to vector<16x128xf32>
    %13 = arith.addf %9, %12 : vector<16x128xf32>
    %14 = vector.broadcast %4 : vector<16x1xf32> to vector<16x128xf32>
    %15 = arith.mulf %14, %13 : vector<16x128xf32>
    %c1 = arith.constant 1 : index
    %c0_12 = arith.constant 0 : index
    %c0_13 = arith.constant 0 : index
    %16 = vector.load %arg14[%c1, %c0_12, %c0_13] : memref<2x16x1xf32, #tpu.memory_space<vmem>>, vector<1x16x1xf32>
    %17 = vector.shape_cast %16 : vector<1x16x1xf32> to vector<16x1xf32>
    %c1_14 = arith.constant 1 : index
    %c0_15 = arith.constant 0 : index
    %c0_16 = arith.constant 0 : index
    %18 = vector.load %arg3[%c1_14, %c0_15, %c0_16] : memref<2x16x128xbf16, #tpu.memory_space<vmem>>, vector<1x16x128xbf16>
    %19 = vector.shape_cast %18 : vector<1x16x128xbf16> to vector<16x128xbf16>
    %c1_17 = arith.constant 1 : index
    %c0_18 = arith.constant 0 : index
    %c0_19 = arith.constant 0 : index
    %20 = vector.load %arg4[%c1_17, %c0_18, %c0_19] : memref<2x128x128xbf16, #tpu.memory_space<vmem>>, vector<1x128x128xbf16>
    %21 = vector.shape_cast %20 : vector<1x128x128xbf16> to vector<128x128xbf16>
    %cst_20 = arith.constant dense<0.000000e+00> : vector<16x128xf32>
    %22 = tpu.matmul %19, %21, %cst_20 {dimension_numbers = #tpu.dot_dimension_numbers<[1], [0], [0], [1], [0, 0, 1, 1], [], []>} : vector<16x128xbf16>, vector<128x128xbf16>, vector<16x128xf32> -> vector<16x128xf32>
    %c1_21 = arith.constant 1 : index
    %c0_22 = arith.constant 0 : index
    %c0_23 = arith.constant 0 : index
    %23 = vector.load %arg5[%c1_21, %c0_22, %c0_23] : memref<2x1x128xf32, #tpu.memory_space<vmem>>, vector<1x1x128xf32>
    %24 = vector.shape_cast %23 : vector<1x1x128xf32> to vector<1x128xf32>
    %25 = vector.broadcast %24 : vector<1x128xf32> to vector<16x128xf32>
    %26 = arith.addf %22, %25 : vector<16x128xf32>
    %27 = vector.broadcast %17 : vector<16x1xf32> to vector<16x128xf32>
    %28 = arith.mulf %27, %26 : vector<16x128xf32>
    %29 = arith.addf %15, %28 : vector<16x128xf32>
    %c0_24 = arith.constant 0 : index
    %c0_25 = arith.constant 0 : index
    %30 = vector.load %arg13[%c0_24, %c0_25] : memref<16x128xf32, #tpu.memory_space<vmem>>, vector<16x128xf32>
    tpu.vector_store %arg13[%c0_24, %c0_25], %29 {strides = array<i32>} : memref<16x128xf32, #tpu.memory_space<vmem>>, vector<16x128xf32>,
    return
  }
  func.func @transform_0(%arg0: i32, %arg1: i32) -> i32 {
    %c0_i32 = arith.constant 0 : i32
    %c0_i32_0 = arith.constant 0 : i32
    return %c0_i32 : i32
  }
  func.func @transform_1(%arg0: i32, %arg1: i32) -> (i32, i32, i32) {
    %c0_i32 = arith.constant 0 : i32
    %c0_i32_0 = arith.constant 0 : i32
    %c0_i32_1 = arith.constant 0 : i32
    return %c0_i32, %arg0, %c0_i32_0 : i32, i32, i32
  }
  func.func @transform_2(%arg0: i32, %arg1: i32) -> (i32, i32, i32) {
    %c0_i32 = arith.constant 0 : i32
    %c0_i32_0 = arith.constant 0 : i32
    %c0_i32_1 = arith.constant 0 : i32
    return %c0_i32, %c0_i32_0, %arg1 : i32, i32, i32
  }
  func.func @transform_3(%arg0: i32, %arg1: i32) -> (i32, i32, i32) {
    %c0_i32 = arith.constant 0 : i32
    %c0_i32_0 = arith.constant 0 : i32
    %c0_i32_1 = arith.constant 0 : i32
    return %c0_i32, %c0_i32_0, %arg1 : i32, i32, i32
  }
  func.func @transform_4(%arg0: i32, %arg1: i32) -> (i32, i32, i32) {
    %c0_i32 = arith.constant 0 : i32
    %c0_i32_0 = arith.constant 0 : i32
    %c0_i32_1 = arith.constant 0 : i32
    %c0_i32_2 = arith.constant 0 : i32
    return %c0_i32, %c0_i32_0, %c0_i32_1 : i32, i32, i32
  }
  func.func @transform_5(%arg0: i32, %arg1: i32) -> (i32, i32, i32) {
    %c0_i32 = arith.constant 0 : i32
    %c0_i32_0 = arith.constant 0 : i32
    %c0_i32_1 = arith.constant 0 : i32
    %c0_i32_2 = arith.constant 0 : i32
    return %c0_i32, %c0_i32_0, %c0_i32_1 : i32, i32, i32
  }
  func.func @transform_6(%arg0: i32, %arg1: i32) -> (i32, i32) {
    %c0_i32 = arith.constant 0 : i32
    %c0_i32_0 = arith.constant 0 : i32
    %c0_i32_1 = arith.constant 0 : i32
    return %c0_i32, %c0_i32_0 : i32, i32
  }
  func.func @transform_7(%arg0: i32, %arg1: i32) -> (i32, i32) {
    %c0_i32 = arith.constant 0 : i32
    %c0_i32_0 = arith.constant 0 : i32
    %c0_i32_1 = arith.constant 0 : i32
    return %c0_i32, %c0_i32_0 : i32, i32
  }
  func.func @transform_8(%arg0: i32, %arg1: i32) -> (i32, i32) {
    %c0_i32 = arith.constant 0 : i32
    %c0_i32_0 = arith.constant 0 : i32
    %c0_i32_1 = arith.constant 0 : i32
    return %c0_i32, %c0_i32_0 : i32, i32
  }
  func.func @transform_9(%arg0: i32, %arg1: i32) -> (i32, i32) {
    %c0_i32 = arith.constant 0 : i32
    %c0_i32_0 = arith.constant 0 : i32
    %c0_i32_1 = arith.constant 0 : i32
    return %c0_i32, %c0_i32_0 : i32, i32
  }
  func.func @transform_10(%arg0: i32, %arg1: i32) -> (i32, i32) {
    %c0_i32 = arith.constant 0 : i32
    %c0_i32_0 = arith.constant 0 : i32
    %c0_i32_1 = arith.constant 0 : i32
    return %c0_i32, %c0_i32_0 : i32, i32
  }
  func.func @transform_11(%arg0: i32, %arg1: i32) -> (i32, i32) {
    %c0_i32 = arith.constant 0 : i32
    return %arg0, %arg1 : i32, i32
  }
}

</mosaic_0001>

<bundles_post_ra>
// kernel: tpu_custom_call.1
= control target key start
LH: loop header
LB: loop body
LE: loop exit
PB: predicated region body
PF: predicated region fallthrough
CT: control target
= control target key end

     0   :  { %16 = vsyncpa [#allocation6], 0  ;;  %s1678_s0 = inlined_call_operand.hbm [shape: f32[2], index: 0, kind: input, shape index: {}]   ;;  %s1679_s1 = inlined_call_operand.hbm [shape: bf16[2,16,128], index: 1, kind: input, shape index: {}]   ;;  %s1680_s2 = inlined_call_operand.hbm [shape: bf16[2,128,128], index: 2, kind: input, shape index: {}]   ;;  %s1681_s3 = inlined_call_operand.vmem [shape: f32[2,1,128], index: 3, kind: input, shape index: {}]   ;;  %s1682_s4 = inlined_call_operand.hbm [shape: bf16[2,128,128], index: 4, kind: input, shape index: {}]   ;;  %s1683_s5 = inlined_call_operand.vmem [shape: f32[2,1,128], index: 5, kind: input, shape index: {}]   ;;  %s1684_s6 = inlined_call_operand.hbm [shape: bf16[256,128], index: 6, kind: input, shape index: {}]   ;;  %s1685_s7 = inlined_call_operand.vmem [shape: f32[1,128], index: 7, kind: input, shape index: {}]   ;;  %s1686_s8 = inlined_call_operand.hbm [shape: bf16[128,128], index: 8, kind: input, shape index: {}]   ;;  %s1687_s9 = inlined_call_operand.vmem [shape: f32[1,128], index: 9, kind: input, shape index: {}]   ;;  %s1688_s10 = inlined_call_operand.vmem [shape: f32[2,128], index: 10, kind: input, shape index: {}]   ;;  %s1689_s11 = inlined_call_operand.hbm [shape: f32[16,128], index: 11, kind: output, shape index: {}]  }
   0x1   :  { %17 = vsyncpa [#allocation4], 0 }
   0x2   :  { %18 = vsyncpa [#allocation9], 0 }
   0x3   :  { %19 = vsyncpa [#allocation12], 0 }
   0x4   :  { %20 = vsyncpa [#allocation5], 0  ;;  %s1488_s17 = smov [#allocation8]   ;;  %s1489_s19 = smov [#allocation11]  }
   0x5   :  { %s46_s18 = sshll.u32 %s1488_s17, 4  ;;  %s74_s20 = sshll.u32 %s1489_s19, 4  ;;  %s47_s18 = int_to_ptr.vmem [resolvable:$true] %s46_s18  ;;  %s75_s20 = int_to_ptr.vmem [resolvable:$true] %s74_s20 }
   0x6   :  { %s1358_s21 = scalar_lea.vmem %s47_s18, 2048  ;;  %p1363_p1 = scmp.lt.s32.totalorder %s47_s18, %s47_s18 }
   0x7   :  { %p1359_p0 = scmp.ne.s32.totalorder %s47_s18, %s1358_s21  ;;  %p1364_p2 = scmp.lt.s32.totalorder %s1358_s21, %s1358_s21 }
   0x9   :  { %p1365_p3 = por %p1364_p2, %p1363_p1 }
   0xb   :  { %p1366_p4 = pnand %p1365_p3, %p1359_p0 }
   0xd   :  { %1369 = shalt.err (!%p1366_p4)
}
   0xe   :  { %s1490_s22 = smov 64   ;;  %s1491_s23 = smov 4  }
   0xf   :  { %52 = dma.hbm_to_vmem [thread:$0]  %s1680_s2, 2048, %s47_s18, [#allocation9], %s1490_s22, %s1490_s22, %s1491_s23  }
  0x10   :  { %s1378_s26 = scalar_lea.vmem %s75_s20, 2048  ;;  %p1383_p6 = scmp.lt.s32.totalorder %s75_s20, %s75_s20 }
  0x11   :  { %p1379_p5 = scmp.ne.s32.totalorder %s75_s20, %s1378_s26  ;;  %p1384_p7 = scmp.lt.s32.totalorder %s1378_s26, %s1378_s26 }
  0x13   :  { %p1385_p8 = por %p1384_p7, %p1383_p6 }
  0x15   :  { %p1386_p9 = pnand %p1385_p8, %p1379_p5 }
  0x17   :  { %1389 = shalt.err (!%p1386_p9)
}
  0x18   :  { %80 = dma.hbm_to_vmem [thread:$0]  %s1684_s6, 2048, %s75_s20, [#allocation12], %s1490_s22, %s1490_s22, %s1491_s23  }
  0x19   :  { %s1492_s29 = smov [#allocation3]   ;;  %s1493_s2 = smov [#allocation7]  }
  0x1a   :  { %28 = dma.hbm_to_smem %s1678_s0, 16, %s1492_s29, [#allocation6]  }
  0x1b   :  { %s34_s13 = sshll.u32 %s1493_s2, 4  ;;  %s1494_s14 = smov [#allocation10]   ;;  %s35_s13 = int_to_ptr.vmem [resolvable:$true] %s34_s13 }
  0x1c   :  { %s60_s15 = sshll.u32 %s1494_s14, 4  ;;  %s1406_s16 = scalar_lea.vmem %s35_s13, 256  ;;  %s61_s15 = int_to_ptr.vmem [resolvable:$true] %s60_s15 }
  0x1d   :  { %p1407_p10 = scmp.ne.s32.totalorder %s35_s13, %s1406_s16  ;;  %p1411_p11 = scmp.lt.s32.totalorder %s35_s13, %s35_s13 }
  0x1e   :  { %p1412_p12 = scmp.lt.s32.totalorder %s1406_s16, %s1406_s16 }
  0x20   :  { %p1413_p13 = por %p1412_p12, %p1411_p11 }
  0x22   :  { %p1414_p0 = pnand %p1413_p13, %p1407_p10 }
  0x24   :  { %1417 = shalt.err (!%p1414_p0)
}
  0x25   :  { %40 = dma.hbm_to_vmem [thread:$0]  %s1679_s1, 256, %s35_s13, [#allocation4], %s1490_s22, %s1490_s22, %s1491_s23  }
  0x26   :  { %s1426_s0 = scalar_lea.vmem %s61_s15, 2048  ;;  %p1431_p2 = scmp.lt.s32.totalorder %s61_s15, %s61_s15 }
  0x27   :  { %p1427_p1 = scmp.ne.s32.totalorder %s61_s15, %s1426_s0  ;;  %p1432_p3 = scmp.lt.s32.totalorder %s1426_s0, %s1426_s0 }
  0x29   :  { %p1433_p4 = por %p1432_p3, %p1431_p2 }
  0x2b   :  { %p1434_p5 = pnand %p1433_p4, %p1427_p1 }
  0x2d   :  { %1437 = shalt.err (!%p1434_p5)
}
  0x2e   :  { %66 = dma.hbm_to_vmem [thread:$0]  %s1682_s4, 2048, %s61_s15, [#allocation9], %s1490_s22, %s1490_s22, %s1491_s23  }
  0x2f   :  { %s1495_s20 = smov [#allocation13]  }
  0x30   :  { %s88_s21 = sshll.u32 %s1495_s20, 4  ;;  %s89_s21 = int_to_ptr.vmem [resolvable:$true] %s88_s21 }
  0x31   :  { %s1446_s24 = scalar_lea.vmem %s89_s21, 1024  ;;  %p1451_p7 = scmp.lt.s32.totalorder %s89_s21, %s89_s21 }
  0x32   :  { %p1447_p6 = scmp.ne.s32.totalorder %s89_s21, %s1446_s24  ;;  %p1452_p8 = scmp.lt.s32.totalorder %s1446_s24, %s1446_s24 }
  0x34   :  { %p1453_p9 = por %p1452_p8, %p1451_p7 }
  0x36   :  { %p1454_p10 = pnand %p1453_p9, %p1447_p6 }
  0x38   :  { %1457 = shalt.err (!%p1454_p10)
}
  0x39   :  { %94 = dma.hbm_to_vmem [thread:$0]  %s1686_s8, 1024, %s89_s21, [#allocation12], %s1490_s22, %s1490_s22, %s1491_s23  }
  0x3a   :  { %1478 = dma.done.wait [#allocation6], 16  }
  0x3b   :  { %1479 = vsyncadd [#allocation6], 4294967280 }
  0x3c   :  { %1480 = dma.done.wait [#allocation4], 256  }
  0x3d   :  { %1481 = vsyncadd [#allocation4], 4294967040 }
  0x3e   :  { %1482 = dma.done.wait [#allocation9], 4096  }
  0x3f   :  { %1483 = vsyncadd [#allocation9], 4294963200 }
  0x40   :  { %1484 = dma.done.wait [#allocation12], 3072  }
  0x41   :  { %1485 = vsyncadd [#allocation12], 4294964224 }
  0x42   :  { %117 = sfence }
  0x43   :  { %v1270_v0 = vld [vmem:[#allocation10 + $0x38] sm:$0xff]   ;;  %v1496_v1 = vmov 0.0   ;;  %v1272_v3 = vld [vmem:[#allocation10 + $0x30] sm:$0xff]   ;;  %vm1497_vm0 = vmmov 0   ;;  %v1274_v5 = vld [vmem:[#allocation10 + $0x28] sm:$0xff]   ;;  %vm714_vm1 = vcmask 7168  }
  0x44   :  { %1154 = vmatprep.subr.bf16.mxu0 %v1496_v1  ;;  %1174 = vmatprep.subr.bf16.mxu1 %v1496_v1  ;;  %v1271_v2 = vld [vmem:[#allocation10 + $0x78] sm:$0xff]   ;;  %v1273_v4 = vld [vmem:[#allocation10 + $0x70] sm:$0xff]   ;;  %v1275_v6 = vld [vmem:[#allocation10 + $0x68] sm:$0xff]   ;;  %s1499_s14 = smov [#allocation14]  }
  0x45   :  { %1155 = vmatpush3.bf16.msra.mxu0 %v1270_v0  ;;  %1170 = vmatprep.mubr.msk.bf16.mxu0 %vm1497_vm0, %v1496_v1  ;;  %v1276_v7 = vld [vmem:[#allocation10 + $0x20] sm:$0xff]   ;;  %v1278_v9 = vld [vmem:[#allocation10 + $0x18] sm:$0xff]   ;;  %v1280_v11 = vld [vmem:[#allocation10 + $0x10] sm:$0xff]   ;;  %s1003_s15 = sshll.u32 %s1499_s14, 4  ;;  %s1004_s15 = int_to_ptr.vmem [resolvable:$true] %s1003_s15 }
  0x46   :  { %1175 = vmatpush3.bf16.msra.mxu1 %v1271_v2  ;;  %1156 = vmatprep.subr.bf16.mxu0 %v1496_v1  ;;  %v1277_v8 = vld [vmem:[#allocation10 + $0x60] sm:$0xff]   ;;  %v1279_v10 = vld [vmem:[#allocation10 + $0x58] sm:$0xff]   ;;  %v1281_v12 = vld [vmem:[#allocation10 + $0x50] sm:$0xff]   ;;  %p1463_p12 = scmp.lt.s32.totalorder %s1004_s15, %s1004_s15 }
  0x47   :  { %1176 = vmatprep.subr.bf16.mxu1 %v1496_v1  ;;  %1190 = vmatprep.mubr.msk.bf16.mxu1 %vm1497_vm0, %v1496_v1  ;;  %v1282_v13 = vld [vmem:[#allocation10 + $0x8] sm:$0xff]   ;;  %v1284_v15 = vld [vmem:[#allocation10] sm:$0xff]   ;;  %v1288_v17 = vld [vmem:[#allocation11 + $0x78] sm:$0xff]  }
  0x48   :  { %v1283_v14 = vld [vmem:[#allocation10 + $0x48] sm:$0xff]   ;;  %v1285_v16 = vld [vmem:[#allocation10 + $0x40] sm:$0xff]   ;;  %v1286_v18 = vld [vmem:[#allocation7] sm:$0xff]  }
  0x49   :  { %1157 = vmatpush3.bf16.msra.mxu0 %v1272_v3  ;;  %v1287_v19 = vld [vmem:[#allocation7 + $0x8] sm:$0xff]   ;;  %v1290_v21 = vld [vmem:[#allocation11 + $0x70] sm:$0xff]   ;;  %v1292_v23 = vld [vmem:[#allocation11 + $0x68] sm:$0xff]  }
  0x4a   :  { %1177 = vmatpush3.bf16.msra.mxu1 %v1273_v4  ;;  %1158 = vmatprep.subr.bf16.mxu0 %v1496_v1  ;;  %v1289_v20 = vld [vmem:[#allocation11 + $0x38] sm:$0xff]   ;;  %v1291_v22 = vld [vmem:[#allocation11 + $0x30] sm:$0xff]   ;;  %v1293_v24 = vld [vmem:[#allocation11 + $0x28] sm:$0xff]  }
  0x4b   :  { %1178 = vmatprep.subr.bf16.mxu1 %v1496_v1  ;;  %v1294_v25 = vld [vmem:[#allocation11 + $0x60] sm:$0xff]   ;;  %v1296_v27 = vld [vmem:[#allocation11 + $0x58] sm:$0xff]   ;;  %v1298_v29 = vld [vmem:[#allocation11 + $0x50] sm:$0xff]  }
  0x4c   :  { %v1295_v26 = vld [vmem:[#allocation11 + $0x20] sm:$0xff]   ;;  %v1297_v28 = vld [vmem:[#allocation11 + $0x18] sm:$0xff]   ;;  %v1299_v30 = vld [vmem:[#allocation11 + $0x10] sm:$0xff]  }
  0x4d   :  { %1159 = vmatpush3.bf16.msra.mxu0 %v1274_v5  ;;  %v1300_v31 = vld [vmem:[#allocation11 + $0x48] sm:$0xff]   ;;  %v1302_v33 = vld [vmem:[#allocation11 + $0x40] sm:$0xff]   ;;  %v1304_v35 = vld [vmem:[#allocation13 + $0x38] sm:$0xff]  }
  0x4e   :  { %1179 = vmatpush3.bf16.msra.mxu1 %v1275_v6  ;;  %1160 = vmatprep.subr.bf16.mxu0 %v1496_v1  ;;  %v1301_v32 = vld [vmem:[#allocation11 + $0x8] sm:$0xff]   ;;  %v1303_v34 = vld [vmem:[#allocation11] sm:$0xff]   ;;  %v1305_v36 = vld [vmem:[#allocation13 + $0x30] sm:$0xff]  }
  0x4f   :  { %1180 = vmatprep.subr.bf16.mxu1 %v1496_v1  ;;  %v1306_v37 = vld [vmem:[#allocation13 + $0x28] sm:$0xff]   ;;  %v1307_v38 = vld [vmem:[#allocation13 + $0x20] sm:$0xff]   ;;  %v1018_v39 = vld [vmem:[%s1683_s5] ss:$0 sm:$0xff] }
  0x50   :  { %v1029_v40 = vld [vmem:[%s1683_s5 + $0x1] ss:$0 sm:$0xff]  ;;  %v1308_v59 = vld [vmem:[#allocation13 + $0x18] sm:$0xff]   ;;  %v1310_v61 = vld [vmem:[#allocation13 + $0x8] sm:$0xff]  }
  0x51   :  { %1161 = vmatpush3.bf16.msra.mxu0 %v1276_v7  ;;  %v1309_v60 = vld [vmem:[#allocation13 + $0x10] sm:$0xff]   ;;  %v1311_v62 = vld [vmem:[#allocation13] sm:$0xff]  }
  0x52   :  { %1181 = vmatpush3.bf16.msra.mxu1 %v1277_v8  ;;  %1162 = vmatprep.subr.bf16.mxu0 %v1496_v1  ;;  %v1039_v3 = vld [vmem:[%s1685_s7] ss:$0 sm:$0xff] }
  0x53   :  { %1182 = vmatprep.subr.bf16.mxu1 %v1496_v1 }
  0x55   :  { %1163 = vmatpush3.bf16.msra.mxu0 %v1278_v9 }
  0x56   :  { %1183 = vmatpush3.bf16.msra.mxu1 %v1279_v10  ;;  %1164 = vmatprep.subr.bf16.mxu0 %v1496_v1 }
  0x57   :  { %1184 = vmatprep.subr.bf16.mxu1 %v1496_v1 }
  0x59   :  { %1165 = vmatpush3.bf16.msra.mxu0 %v1280_v11 }
  0x5a   :  { %1185 = vmatpush3.bf16.msra.mxu1 %v1281_v12  ;;  %1166 = vmatprep.subr.bf16.mxu0 %v1496_v1  ;;  %v1312_v12 = vld [vmem:[#allocation8 + $0x38] sm:$0xff]  }
  0x5b   :  { %1186 = vmatprep.subr.bf16.mxu1 %v1496_v1 }
  0x5d   :  { %1167 = vmatpush3.bf16.msra.mxu0 %v1282_v13  ;;  %v1313_v13 = vld [vmem:[#allocation8 + $0x78] sm:$0xff]  }
  0x5e   :  { %1187 = vmatpush3.bf16.msra.mxu1 %v1283_v14  ;;  %1168 = vmatprep.subr.bf16.mxu0 %v1496_v1  ;;  %v1314_v14 = vld [vmem:[#allocation8 + $0x30] sm:$0xff]  }
  0x5f   :  { %1188 = vmatprep.subr.bf16.mxu1 %v1496_v1 }
  0x61   :  { %1169 = vmatpush3.bf16.msra.mxu0 %v1284_v15  ;;  %v1315_v15 = vld [vmem:[#allocation8 + $0x70] sm:$0xff]  }
  0x62   :  { %1189 = vmatpush3.bf16.msra.mxu1 %v1285_v16  ;;  %1105 = vmatprep.subr.bf16.mxu0 %v1288_v17  ;;  %v1316_v16 = vld [vmem:[#allocation8 + $0x28] sm:$0xff]  }
  0x63   :  { %1194 = vmatprep.subr.bf16.mxu1 %v1496_v1  ;;  %v1317_v17 = vld [vmem:[#allocation8 + $0x68] sm:$0xff]  }
  0x64   :  { %1171 = vmatmul.mubr.bf16.vlgmr.msra.gmra.mxu0 %v1286_v18  ;;  %v1318_v18 = vld [vmem:[#allocation8 + $0x20] sm:$0xff]  }
  0x65   :  { %1191 = vmatmul.mubr.bf16.vlgmr.msra.gmra.mxu1 %v1287_v19  ;;  %1106 = vmatpush3.bf16.msra.mxu0 %v1289_v20  ;;  %v1319_v19 = vld [vmem:[#allocation8 + $0x60] sm:$0xff]   ;;  %v1320_v20 = vld [vmem:[#allocation8 + $0x18] sm:$0xff]  }
  0x66   :  { %1107 = vmatprep.subr.bf16.mxu0 %v1290_v21  ;;  %1210 = vmatprep.mubr.msk.bf16.mxu1 %vm1497_vm0, %v1496_v1  ;;  %v1321_v21 = vld [vmem:[#allocation8 + $0x58] sm:$0xff]  }
  0x67   :  { %1195 = vmatpush3.bf16.msra.mxu1 %v1304_v35  ;;  %v665_v35 = vld [vmem:[%s1688_s10] sm:$0x3]  ;;  %s676_s10 = sld [smem:[#allocation3]] }
  0x68   :  { %1196 = vmatprep.subr.bf16.mxu1 %v1496_v1 }
  0x69   :  { %1108 = vmatpush3.bf16.msra.mxu0 %v1291_v22  ;;  %v1322_v22 = vld [vmem:[#allocation8 + $0x10] sm:$0xff]  }
  0x6a   :  { %1109 = vmatprep.subr.bf16.mxu0 %v1292_v23  ;;  %v1323_v23 = vld [vmem:[#allocation8 + $0x50] sm:$0xff]  }
  0x6b   :  { %1197 = vmatpush3.bf16.msra.mxu1 %v1305_v36 }
  0x6c   :  { %1198 = vmatprep.subr.bf16.mxu1 %v1496_v1 }
  0x6d   :  { %1110 = vmatpush3.bf16.msra.mxu0 %v1293_v24  ;;  %v1324_v24 = vld [vmem:[#allocation8 + $0x8] sm:$0xff]  }
  0x6e   :  { %1111 = vmatprep.subr.bf16.mxu0 %v1294_v25  ;;  %v1325_v25 = vld [vmem:[#allocation8 + $0x48] sm:$0xff]  }
  0x6f   :  { %1199 = vmatpush3.bf16.msra.mxu1 %v1306_v37 }
  0x70   :  { %1200 = vmatprep.subr.bf16.mxu1 %v1496_v1 }
  0x71   :  { %1112 = vmatpush3.bf16.msra.mxu0 %v1295_v26  ;;  %v1326_v26 = vld [vmem:[#allocation8] sm:$0xff]  }
  0x72   :  { %1113 = vmatprep.subr.bf16.mxu0 %v1296_v27  ;;  %v1327_v27 = vld [vmem:[#allocation8 + $0x40] sm:$0xff]  }
  0x73   :  { %1201 = vmatpush3.bf16.msra.mxu1 %v1307_v38 }
  0x74   :  { %1202 = vmatprep.subr.bf16.mxu1 %v1496_v1 }
  0x75   :  { %1114 = vmatpush3.bf16.msra.mxu0 %v1297_v28  ;;  %v1328_v28 = vld [vmem:[#allocation7] sm:$0xff]  }
  0x76   :  { %1115 = vmatprep.subr.bf16.mxu0 %v1298_v29  ;;  %v1329_v29 = vld [vmem:[#allocation7 + $0x8] sm:$0xff]  }
  0x77   :  { %1203 = vmatpush3.bf16.msra.mxu1 %v1308_v59 }
  0x78   :  { %1204 = vmatprep.subr.bf16.mxu1 %v1496_v1 }
  0x79   :  { %1116 = vmatpush3.bf16.msra.mxu0 %v1299_v30  ;;  %v666_v30 = vlaneseq }
  0x7a   :  { %1117 = vmatprep.subr.bf16.mxu0 %v1300_v31 }
  0x7b   :  { %1205 = vmatpush3.bf16.msra.mxu1 %v1309_v60  ;;  %v667_v31 = vshrl.u32 %v666_v30, 7 }
  0x7c   :  { %1206 = vmatprep.subr.bf16.mxu1 %v1496_v1 }
  0x7d   :  { %1118 = vmatpush3.bf16.msra.mxu0 %v1301_v32  ;;  %v682_v32 = vsub.s32 1, %v667_v31 }
  0x7e   :  { %1119 = vmatprep.subr.bf16.mxu0 %v1302_v33  ;;  %v668_v33 = vsub.s32 0, %v667_v31  ;;  %v1066_v31 = vld [vmem:[%s1681_s3] ss:$0 sm:$0xff] }
  0x7f   :  { %1207 = vmatpush3.bf16.msra.mxu1 %v1310_v61  ;;  %v683_v37 = vrot.slane %v665_v35, %v682_v32  ;;  %v1077_v32 = vld [vmem:[%s1681_s3 + $0x1] ss:$0 sm:$0xff]  ;;  %s1458_s3 = scalar_lea.vmem %s1004_s15, 256 }
  0x80   :  { %1208 = vmatprep.subr.bf16.mxu1 %v1496_v1  ;;  %v669_v38 = vrot.slane %v665_v35, %v668_v33  ;;  %p1459_p11 = scmp.ne.s32.totalorder %s1004_s15, %s1458_s3  ;;  %p1464_p13 = scmp.lt.s32.totalorder %s1458_s3, %s1458_s3 }
  0x81   :  { %1120 = vmatpush3.bf16.msra.mxu0 %v1303_v34  ;;  %v1056_v34 = vld [vmem:[%s1687_s9] ss:$0 sm:$0xff]  ;;  %s1065_s9 = sld [smem:[#allocation3 + $0x1]] }
  0x82   :  { %1214 = vmatprep.subr.bf16.mxu0 %v1496_v1  ;;  %p1465_p0 = por %p1464_p13, %p1463_p12 }
  0x83   :  { %1209 = vmatpush3.bf16.msra.mxu1 %v1311_v62 }
  0x84   :  { %1234 = vmatprep.subr.bf16.mxu1 %v1496_v1  ;;  %p1466_p1 = pnand %p1465_p0, %p1459_p11 }
 0x124   :  { %v236_v41 = vpop.f32.mrf.mxu0 }
 0x125   :  { %v237_v42 = vadd.f32 %v1018_v39, %v236_v41  ;;  %v362_v43 = vpop.f32.mrf.mxu1 }
 0x126   :  { %v363_v44 = vadd.f32 %v1029_v40, %v362_v43  ;;  %v1172_v45 = vpop.f32.mrf.mxu0 }
 0x127   :  { %v1192_v46 = vpop.f32.mrf.mxu1  ;;  %1330 = vtanh.f32 %v237_v42 }
 0x128   :  { %v239_v47 = vpop.f32.mrf.mxu0  ;;  %1332 = vtanh.f32 %v363_v44 }
 0x129   :  { %v240_v48 = vadd.f32 %v1018_v39, %v239_v47  ;;  %v365_v49 = vpop.f32.mrf.mxu1 }
 0x12a   :  { %v366_v50 = vadd.f32 %v1029_v40, %v365_v49  ;;  %v1173_v51 = vpop.f32.mrf.mxu0  ;;  %v1498_v49 = vmov 0  }
 0x12b   :  { %1334 = vtanh.f32 %v240_v48  ;;  %v1193_v52 = vpop.f32.mrf.mxu1  ;;  %1269 = vset.pattern.permute.xlu1 %v1498_v49  ;;  %1268 = vset.pattern.permute.xlu0 %v1498_v49 }
 0x12c   :  { %1336 = vtanh.f32 %v366_v50 }
 0x134   :  { %v1331_v53 = vpop.eup %1330 }
 0x135   :  { %v1333_v54 = vpop.eup %1332 }
 0x138   :  { %v1335_v55 = vpop.eup %1334 }
 0x139   :  { %v1337_v56 = vpop.eup %1336  ;;  %v245_v57 = vpack.c.bf16 %v1335_v55, %v1331_v53 }
 0x13a   :  { %v371_v58 = vpack.c.bf16 %v1337_v56, %v1333_v54  ;;  %v691_v56 = vstv %s1065_s9 }
 0x13c   :  { %539 = vmatprep.mubr.bf16.mxu0 %v371_v58 }
 0x13d   :  { %540 = vmatmul.mubr.bf16.vlgmr.msra.gmra.mxu0 %v245_v57  ;;  %v677_v57 = vstv %s676_s10 }
 0x13e   :  { %1230 = vmatprep.mubr.msk.bf16.mxu0 %vm1497_vm0, %v1496_v1  ;;  %1215 = vmatpush3.bf16.msra.mxu0 %v1312_v12 }
 0x13f   :  { %1216 = vmatprep.subr.bf16.mxu0 %v1496_v1 }
 0x142   :  { %1217 = vmatpush3.bf16.msra.mxu0 %v1314_v14 }
 0x143   :  { %1218 = vmatprep.subr.bf16.mxu0 %v1496_v1 }
 0x146   :  { %1219 = vmatpush3.bf16.msra.mxu0 %v1316_v16 }
 0x147   :  { %1220 = vmatprep.subr.bf16.mxu0 %v1496_v1 }
 0x14a   :  { %1221 = vmatpush3.bf16.msra.mxu0 %v1318_v18 }
 0x14b   :  { %1222 = vmatprep.subr.bf16.mxu0 %v1496_v1 }
 0x14e   :  { %1223 = vmatpush3.bf16.msra.mxu0 %v1320_v20 }
 0x14f   :  { %1224 = vmatprep.subr.bf16.mxu0 %v1496_v1 }
 0x152   :  { %1225 = vmatpush3.bf16.msra.mxu0 %v1322_v22 }
 0x153   :  { %1226 = vmatprep.subr.bf16.mxu0 %v1496_v1 }
 0x156   :  { %1227 = vmatpush3.bf16.msra.mxu0 %v1324_v24 }
 0x157   :  { %1228 = vmatprep.subr.bf16.mxu0 %v1496_v1 }
 0x15a   :  { %1229 = vmatpush3.bf16.msra.mxu0 %v1326_v26 }
 0x15d   :  { %1231 = vmatmul.mubr.bf16.vlgmr.msra.gmra.mxu0 %v1328_v28 }
 0x1fd   :  { %v1121_v63 = vpop.f32.mrf.mxu0 }
 0x1ff   :  { %v1122_v0 = vpop.f32.mrf.mxu0 }
 0x200   :  { %v1123_v2 = vadd.f32 %v1122_v0, %v1121_v63 }
 0x201   :  { %v1124_v4 = vpop.f32.mrf.mxu0 }
 0x202   :  { %v542_v6 = vadd.f32 %v1123_v2, %v1039_v3 }
 0x203   :  { %v1125_v5 = vpop.f32.mrf.mxu0 }
 0x204   :  { %v1126_v7 = vadd.f32 %v1125_v5, %v1124_v4  ;;  %v548_v9 = vmax.f32 %v542_v6, 0.0 }
 0x206   :  { %v545_v8 = vadd.f32 %v1126_v7, %v1039_v3 }
 0x208   :  { %v549_v10 = vmax.f32 %v545_v8, 0.0 }
 0x20a   :  { %v550_v11 = vpack.c.bf16 %v549_v10, %v548_v9 }
 0x20c   :  { %1211 = vmatmul.mubr.bf16.vlgmr.msra.gmra.mxu1 %v550_v11 }
 0x20d   :  { %1250 = vmatprep.mubr.msk.bf16.mxu1 %vm1497_vm0, %v1496_v1  ;;  %1235 = vmatpush3.bf16.msra.mxu1 %v1313_v13 }
 0x20e   :  { %1236 = vmatprep.subr.bf16.mxu1 %v1496_v1 }
 0x211   :  { %1237 = vmatpush3.bf16.msra.mxu1 %v1315_v15 }
 0x212   :  { %1238 = vmatprep.subr.bf16.mxu1 %v1496_v1 }
 0x215   :  { %1239 = vmatpush3.bf16.msra.mxu1 %v1317_v17 }
 0x216   :  { %1240 = vmatprep.subr.bf16.mxu1 %v1496_v1 }
 0x219   :  { %1241 = vmatpush3.bf16.msra.mxu1 %v1319_v19 }
 0x21a   :  { %1242 = vmatprep.subr.bf16.mxu1 %v1496_v1 }
 0x21d   :  { %1243 = vmatpush3.bf16.msra.mxu1 %v1321_v21  ;;  %v1660_v50 = vpop.f32.mrf.mxu0 }
 0x21e   :  { %1244 = vmatprep.subr.bf16.mxu1 %v1496_v1  ;;  %v838_v33 = vadd.f32 %v1066_v31, %v1660_v50 }
 0x21f   :  { %v1232_v52 = vpop.f32.mrf.mxu0 }
 0x221   :  { %1245 = vmatpush3.bf16.msra.mxu1 %v1323_v23  ;;  %v1664_v54 = vpop.f32.mrf.mxu0 }
 0x222   :  { %1246 = vmatprep.subr.bf16.mxu1 %v1496_v1 }
 0x223   :  { %v1233_v55 = vpop.f32.mrf.mxu0 }
 0x225   :  { %1247 = vmatpush3.bf16.msra.mxu1 %v1325_v25 }
 0x226   :  { %1248 = vmatprep.subr.bf16.mxu1 %v1496_v1 }
 0x229   :  { %1249 = vmatpush3.bf16.msra.mxu1 %v1327_v27 }
 0x22c   :  { %1251 = vmatmul.mubr.bf16.vlgmr.msra.gmra.mxu1 %v1329_v29 }
 0x2cc   :  { %v656_v36 = vpop.f32.mrf.mxu1 }
 0x2cd   :  { %v657_v1 = vadd.f32 %v1056_v34, %v656_v36 }
 0x2ce   :  { %v1212_v39 = vpop.f32.mrf.mxu1 }
 0x2cf   :  { %v663_v40 = vmax.f32 %v657_v1, 0.0 }
 0x2d0   :  { %v659_v41 = vpop.f32.mrf.mxu1 }
 0x2d1   :  { %v660_v42 = vadd.f32 %v1056_v34, %v659_v41  ;;  %v684_v43 = vmul.f32 %v683_v37, %v663_v40  ;;  %v670_v44 = vmul.f32 %v669_v38, %v663_v40  ;;  %v841_v40 = vadd.f32 %v1066_v31, %v1664_v54 }
 0x2d2   :  { %v1213_v45 = vpop.f32.mrf.mxu1 }
 0x2d3   :  { %v664_v46 = vmax.f32 %v660_v42, 0.0  ;;  %686 = vadd.xlane.f32.xlu1 %v684_v43  ;;  %672 = vadd.xlane.f32.xlu0 %v670_v44 }
 0x2d5   :  { %v685_v47 = vmul.f32 %v683_v37, %v664_v46  ;;  %v671_v48 = vmul.f32 %v669_v38, %v664_v46 }
 0x2d7   :  { %688 = vadd.xlane.f32.xlu1 %v685_v47  ;;  %674 = vadd.xlane.f32.xlu0 %v671_v48 }
 0x2ec   :  { %v1662_v51 = vpop.f32.mrf.mxu1 }
 0x2ed   :  { %v976_v34 = vadd.f32 %v1077_v32, %v1662_v51 }
 0x2ee   :  { %v1252_v53 = vpop.f32.mrf.mxu1 }
 0x2f0   :  { %v978_v25 = vpop.f32.mrf.mxu1 }
 0x2f1   :  { %v979_v41 = vadd.f32 %v1077_v32, %v978_v25 }
 0x2f2   :  { %v1253_v26 = vpop.f32.mrf.mxu1 }
 0x35c   :  { %v687_v58 = vpop.xlane.xlu1 %686  ;;  %v673_v59 = vpop.xlane.xlu0 %672 }
 0x35d   :  { %v692_v60 = vadd.f32 %v691_v56, %v687_v58  ;;  %v678_v61 = vadd.f32 %v677_v57, %v673_v59 }
 0x35f   :  { %v694_v62 = vmax.f32 %v678_v61, %v692_v60 }
 0x360   :  { %v689_v63 = vpop.xlane.xlu1 %688  ;;  %v675_v0 = vpop.xlane.xlu0 %674 }
 0x361   :  { %v696_v2 = vsub.f32 %v678_v61, %v694_v62  ;;  %v702_v3 = vsub.f32 %v692_v60, %v694_v62  ;;  %v693_v4 = vadd.f32 %v691_v56, %v689_v63  ;;  %v679_v5 = vadd.f32 %v677_v57, %v675_v0 }
 0x363   :  { %v698_v6 = vmul.f32 1.442695, %v696_v2  ;;  %v704_v7 = vmul.f32 1.442695, %v702_v3  ;;  %v695_v8 = vmax.f32 %v679_v5, %v693_v4 }
 0x365   :  { %1338 = vpow2.f32 %v698_v6  ;;  %v697_v9 = vsub.f32 %v679_v5, %v695_v8  ;;  %v703_v10 = vsub.f32 %v693_v4, %v695_v8 }
 0x366   :  { %1340 = vpow2.f32 %v704_v7 }
 0x367   :  { %v700_v11 = vmul.f32 1.442695, %v697_v9  ;;  %v706_v12 = vmul.f32 1.442695, %v703_v10 }
 0x369   :  { %1342 = vpow2.f32 %v700_v11 }
 0x36a   :  { %1344 = vpow2.f32 %v706_v12 }
 0x372   :  { %v1339_v13 = vpop.eup %1338 }
 0x373   :  { %v1341_v14 = vpop.eup %1340 }
 0x374   :  { %v708_v15 = vadd.f32 %v1341_v14, %v1339_v13 }
 0x376   :  { %v1343_v16 = vpop.eup %1342  ;;  %1346 = vrcp.f32 %v708_v15 }
 0x377   :  { %v1345_v17 = vpop.eup %1344 }
 0x378   :  { %v709_v18 = vadd.f32 %v1345_v17, %v1343_v16 }
 0x37a   :  { %1348 = vrcp.f32 %v709_v18 }
 0x383   :  { %v1347_v19 = vpop.eup %1346 }
 0x384   :  { %v712_v20 = vmul.f32 %v1347_v19, %v1339_v13  ;;  %v717_v21 = vmul.f32 %v1347_v19, %v1341_v14 }
 0x386   :  { %715 = vst.msk [vmem:[#allocation2] sm:$0xff] %vm714_vm1, %v712_v20  ;;  %720 = vst.msk [vmem:[#allocation2 + $0x10] sm:$0xff] %vm714_vm1, %v717_v21 }
 0x387   :  { %v1349_v22 = vpop.eup %1348 }
 0x388   :  { %v713_v23 = vmul.f32 %v1349_v22, %v1343_v16  ;;  %v718_v24 = vmul.f32 %v1349_v22, %v1345_v17 }
 0x38a   :  { %716 = vst.msk [vmem:[#allocation2 + $0x8] sm:$0xff] %vm714_vm1, %v713_v23  ;;  %721 = vst.msk [vmem:[#allocation2 + $0x18] sm:$0xff] %vm714_vm1, %v718_v24 }
 0x38d   :  { %v857_v27 = vld [vmem:[#allocation2 + $0x10] sm:$0xff]  ;;  %v722_v28 = vld [vmem:[#allocation2] sm:$0xff] }
 0x38e   :  { %984 = vperm.xlu1 %1269, %v857_v27   ;;  %846 = vperm.xlu0 %1268, %v722_v28  }
 0x391   :  { %v723_v29 = vld [vmem:[#allocation2 + $0x8] sm:$0xff]  ;;  %v858_v30 = vld [vmem:[#allocation2 + $0x18] sm:$0xff] }
 0x392   :  { %851 = vperm.xlu1 %1269, %v723_v29  }
 0x396   :  { %989 = vperm.xlu1 %1269, %v858_v30  }
 0x409   :  { %v985_v35 = vpop.permute.xlu1 %984  ;;  %v847_v36 = vpop.permute.xlu0 %846 }
 0x40a   :  { %v992_v1 = vmul.f32 %v985_v35, %v976_v34  ;;  %v854_v37 = vmul.f32 %v847_v36, %v838_v33 }
 0x40c   :  { %v994_v38 = vadd.f32 %v992_v1, %v854_v37 }
 0x40d   :  { %v852_v39 = vpop.permute.xlu1 %851 }
 0x40e   :  { %996 = vst [vmem:[#allocation14] sm:$0xff] %v994_v38  ;;  %v855_v43 = vmul.f32 %v852_v39, %v841_v40 }
 0x411   :  { %v990_v42 = vpop.permute.xlu1 %989 }
 0x412   :  { %v993_v44 = vmul.f32 %v990_v42, %v979_v41 }
 0x414   :  { %v995_v45 = vadd.f32 %v993_v44, %v855_v43 }
 0x416   :  { %997 = vst [vmem:[#allocation14 + $0x8] sm:$0xff] %v995_v45 }
 0x417   :  { %1469 = shalt.err (!%p1466_p1)
}
 0x418   :  { %s1500_s16 = smov 128   ;;  %s1501_s6 = smov 8  }
 0x419   :  { %1009 = dma.vmem_to_hbm [thread:$0]  %s1004_s15, 256, %s1689_s11, [#allocation5], %s1500_s16, %s1500_s16, %s1501_s6  }
 0x41a   :  { %1486 = dma.done.wait [#allocation5], 256  }
 0x41b   :  { %1487 = vsyncadd [#allocation5], 4294967040 }
 0x41c   :  { %1013 = vsyncpa [#allocation4], 1 }
 0x41d   :  { %1014 = vsyncpa [#allocation9], 1 }
 0x41e   :  { %1015 = vsyncpa [#allocation12], 1 }
 0x41f   :  { %1016 = vsyncpa [#allocation5], 1 }
 0x420   :  { %1017 = vsyncpa [#allocation6], 1 }

// kernel: tpu_custom_call.1
= control target key start
LH: loop header
LB: loop body
LE: loop exit
PB: predicated region body
PF: predicated region fallthrough
CT: control target
= control target key end

     0   :  { %16 = vsyncpa [#allocation6], 0  ;;  %s1678_s0 = inlined_call_operand.hbm [shape: f32[2], index: 0, kind: input, shape index: {}]   ;;  %s1679_s1 = inlined_call_operand.hbm [shape: bf16[2,16,128], index: 1, kind: input, shape index: {}]   ;;  %s1680_s2 = inlined_call_operand.hbm [shape: bf16[2,128,128], index: 2, kind: input, shape index: {}]   ;;  %s1681_s3 = inlined_call_operand.vmem [shape: f32[2,1,128], index: 3, kind: input, shape index: {}]   ;;  %s1682_s4 = inlined_call_operand.hbm [shape: bf16[2,128,128], index: 4, kind: input, shape index: {}]   ;;  %s1683_s5 = inlined_call_operand.vmem [shape: f32[2,1,128], index: 5, kind: input, shape index: {}]   ;;  %s1684_s6 = inlined_call_operand.hbm [shape: bf16[256,128], index: 6, kind: input, shape index: {}]   ;;  %s1685_s7 = inlined_call_operand.vmem [shape: f32[1,128], index: 7, kind: input, shape index: {}]   ;;  %s1686_s8 = inlined_call_operand.hbm [shape: bf16[128,128], index: 8, kind: input, shape index: {}]   ;;  %s1687_s9 = inlined_call_operand.vmem [shape: f32[1,128], index: 9, kind: input, shape index: {}]   ;;  %s1688_s10 = inlined_call_operand.vmem [shape: f32[2,128], index: 10, kind: input, shape index: {}]   ;;  %s1689_s11 = inlined_call_operand.hbm [shape: f32[16,128], index: 11, kind: output, shape index: {}]  }
   0x1   :  { %17 = vsyncpa [#allocation4], 0 }
   0x2   :  { %18 = vsyncpa [#allocation9], 0 }
   0x3   :  { %19 = vsyncpa [#allocation12], 0 }
   0x4   :  { %20 = vsyncpa [#allocation5], 0  ;;  %s1488_s17 = smov [#allocation8]   ;;  %s1489_s19 = smov [#allocation11]  }
   0x5   :  { %s46_s18 = sshll.u32 %s1488_s17, 4  ;;  %s74_s20 = sshll.u32 %s1489_s19, 4  ;;  %s47_s18 = int_to_ptr.vmem [resolvable:$true] %s46_s18  ;;  %s75_s20 = int_to_ptr.vmem [resolvable:$true] %s74_s20 }
   0x6   :  { %s1358_s21 = scalar_lea.vmem %s47_s18, 2048  ;;  %p1363_p1 = scmp.lt.s32.totalorder %s47_s18, %s47_s18 }
   0x7   :  { %p1359_p0 = scmp.ne.s32.totalorder %s47_s18, %s1358_s21  ;;  %p1364_p2 = scmp.lt.s32.totalorder %s1358_s21, %s1358_s21 }
   0x9   :  { %p1365_p3 = por %p1364_p2, %p1363_p1 }
   0xb   :  { %p1366_p4 = pnand %p1365_p3, %p1359_p0 }
   0xd   :  { %1369 = shalt.err (!%p1366_p4)
}
   0xe   :  { %s1490_s22 = smov 64   ;;  %s1491_s23 = smov 4  }
   0xf   :  { %52 = dma.hbm_to_vmem [thread:$0]  %s1680_s2, 2048, %s47_s18, [#allocation9], %s1490_s22, %s1490_s22, %s1491_s23  }
  0x10   :  { %s1378_s26 = scalar_lea.vmem %s75_s20, 2048  ;;  %p1383_p6 = scmp.lt.s32.totalorder %s75_s20, %s75_s20 }
  0x11   :  { %p1379_p5 = scmp.ne.s32.totalorder %s75_s20, %s1378_s26  ;;  %p1384_p7 = scmp.lt.s32.totalorder %s1378_s26, %s1378_s26 }
  0x13   :  { %p1385_p8 = por %p1384_p7, %p1383_p6 }
  0x15   :  { %p1386_p9 = pnand %p1385_p8, %p1379_p5 }
  0x17   :  { %1389 = shalt.err (!%p1386_p9)
}
  0x18   :  { %80 = dma.hbm_to_vmem [thread:$0]  %s1684_s6, 2048, %s75_s20, [#allocation12], %s1490_s22, %s1490_s22, %s1491_s23  }
  0x19   :  { %s1492_s29 = smov [#allocation3]   ;;  %s1493_s2 = smov [#allocation7]  }
  0x1a   :  { %28 = dma.hbm_to_smem %s1678_s0, 16, %s1492_s29, [#allocation6]  }
  0x1b   :  { %s34_s13 = sshll.u32 %s1493_s2, 4  ;;  %s1494_s14 = smov [#allocation10]   ;;  %s35_s13 = int_to_ptr.vmem [resolvable:$true] %s34_s13 }
  0x1c   :  { %s60_s15 = sshll.u32 %s1494_s14, 4  ;;  %s1406_s16 = scalar_lea.vmem %s35_s13, 256  ;;  %s61_s15 = int_to_ptr.vmem [resolvable:$true] %s60_s15 }
  0x1d   :  { %p1407_p10 = scmp.ne.s32.totalorder %s35_s13, %s1406_s16  ;;  %p1411_p11 = scmp.lt.s32.totalorder %s35_s13, %s35_s13 }
  0x1e   :  { %p1412_p12 = scmp.lt.s32.totalorder %s1406_s16, %s1406_s16 }
  0x20   :  { %p1413_p13 = por %p1412_p12, %p1411_p11 }
  0x22   :  { %p1414_p0 = pnand %p1413_p13, %p1407_p10 }
  0x24   :  { %1417 = shalt.err (!%p1414_p0)
}
  0x25   :  { %40 = dma.hbm_to_vmem [thread:$0]  %s1679_s1, 256, %s35_s13, [#allocation4], %s1490_s22, %s1490_s22, %s1491_s23  }
  0x26   :  { %s1426_s0 = scalar_lea.vmem %s61_s15, 2048  ;;  %p1431_p2 = scmp.lt.s32.totalorder %s61_s15, %s61_s15 }
  0x27   :  { %p1427_p1 = scmp.ne.s32.totalorder %s61_s15, %s1426_s0  ;;  %p1432_p3 = scmp.lt.s32.totalorder %s1426_s0, %s1426_s0 }
  0x29   :  { %p1433_p4 = por %p1432_p3, %p1431_p2 }
  0x2b   :  { %p1434_p5 = pnand %p1433_p4, %p1427_p1 }
  0x2d   :  { %1437 = shalt.err (!%p1434_p5)
}
  0x2e   :  { %66 = dma.hbm_to_vmem [thread:$0]  %s1682_s4, 2048, %s61_s15, [#allocation9], %s1490_s22, %s1490_s22, %s1491_s23  }
  0x2f   :  { %s1495_s20 = smov [#allocation13]  }
  0x30   :  { %s88_s21 = sshll.u32 %s1495_s20, 4  ;;  %s89_s21 = int_to_ptr.vmem [resolvable:$true] %s88_s21 }
  0x31   :  { %s1446_s24 = scalar_lea.vmem %s89_s21, 1024  ;;  %p1451_p7 = scmp.lt.s32.totalorder %s89_s21, %s89_s21 }
  0x32   :  { %p1447_p6 = scmp.ne.s32.totalorder %s89_s21, %s1446_s24  ;;  %p1452_p8 = scmp.lt.s32.totalorder %s1446_s24, %s1446_s24 }
  0x34   :  { %p1453_p9 = por %p1452_p8, %p1451_p7 }
  0x36   :  { %p1454_p10 = pnand %p1453_p9, %p1447_p6 }
  0x38   :  { %1457 = shalt.err (!%p1454_p10)
}
  0x39   :  { %94 = dma.hbm_to_vmem [thread:$0]  %s1686_s8, 1024, %s89_s21, [#allocation12], %s1490_s22, %s1490_s22, %s1491_s23  }
  0x3a   :  { %1478 = dma.done.wait [#allocation6], 16  }
  0x3b   :  { %1479 = vsyncadd [#allocation6], 4294967280 }
  0x3c   :  { %1480 = dma.done.wait [#allocation4], 256  }
  0x3d   :  { %1481 = vsyncadd [#allocation4], 4294967040 }
  0x3e   :  { %1482 = dma.done.wait [#allocation9], 4096  }
  0x3f   :  { %1483 = vsyncadd [#allocation9], 4294963200 }
  0x40   :  { %1484 = dma.done.wait [#allocation12], 3072  }
  0x41   :  { %1485 = vsyncadd [#allocation12], 4294964224 }
  0x42   :  { %117 = sfence }
  0x43   :  { %v1270_v0 = vld [vmem:[#allocation10 + $0x38] sm:$0xff]   ;;  %v1496_v1 = vmov 0.0   ;;  %v1272_v3 = vld [vmem:[#allocation10 + $0x30] sm:$0xff]   ;;  %vm1497_vm0 = vmmov 0   ;;  %v1274_v5 = vld [vmem:[#allocation10 + $0x28] sm:$0xff]   ;;  %vm714_vm1 = vcmask 7168  }
  0x44   :  { %1154 = vmatprep.subr.bf16.mxu0 %v1496_v1  ;;  %1174 = vmatprep.subr.bf16.mxu1 %v1496_v1  ;;  %v1271_v2 = vld [vmem:[#allocation10 + $0x78] sm:$0xff]   ;;  %v1273_v4 = vld [vmem:[#allocation10 + $0x70] sm:$0xff]   ;;  %v1275_v6 = vld [vmem:[#allocation10 + $0x68] sm:$0xff]   ;;  %s1499_s14 = smov [#allocation14]  }
  0x45   :  { %1155 = vmatpush3.bf16.msra.mxu0 %v1270_v0  ;;  %1170 = vmatprep.mubr.msk.bf16.mxu0 %vm1497_vm0, %v1496_v1  ;;  %v1276_v7 = vld [vmem:[#allocation10 + $0x20] sm:$0xff]   ;;  %v1278_v9 = vld [vmem:[#allocation10 + $0x18] sm:$0xff]   ;;  %v1280_v11 = vld [vmem:[#allocation10 + $0x10] sm:$0xff]   ;;  %s1003_s15 = sshll.u32 %s1499_s14, 4  ;;  %s1004_s15 = int_to_ptr.vmem [resolvable:$true] %s1003_s15 }
  0x46   :  { %1175 = vmatpush3.bf16.msra.mxu1 %v1271_v2  ;;  %1156 = vmatprep.subr.bf16.mxu0 %v1496_v1  ;;  %v1277_v8 = vld [vmem:[#allocation10 + $0x60] sm:$0xff]   ;;  %v1279_v10 = vld [vmem:[#allocation10 + $0x58] sm:$0xff]   ;;  %v1281_v12 = vld [vmem:[#allocation10 + $0x50] sm:$0xff]   ;;  %p1463_p12 = scmp.lt.s32.totalorder %s1004_s15, %s1004_s15 }
  0x47   :  { %1176 = vmatprep.subr.bf16.mxu1 %v1496_v1  ;;  %1190 = vmatprep.mubr.msk.bf16.mxu1 %vm1497_vm0, %v1496_v1  ;;  %v1282_v13 = vld [vmem:[#allocation10 + $0x8] sm:$0xff]   ;;  %v1284_v15 = vld [vmem:[#allocation10] sm:$0xff]   ;;  %v1288_v17 = vld [vmem:[#allocation11 + $0x78] sm:$0xff]  }
  0x48   :  { %v1283_v14 = vld [vmem:[#allocation10 + $0x48] sm:$0xff]   ;;  %v1285_v16 = vld [vmem:[#allocation10 + $0x40] sm:$0xff]   ;;  %v1286_v18 = vld [vmem:[#allocation7] sm:$0xff]  }
  0x49   :  { %1157 = vmatpush3.bf16.msra.mxu0 %v1272_v3  ;;  %v1287_v19 = vld [vmem:[#allocation7 + $0x8] sm:$0xff]   ;;  %v1290_v21 = vld [vmem:[#allocation11 + $0x70] sm:$0xff]   ;;  %v1292_v23 = vld [vmem:[#allocation11 + $0x68] sm:$0xff]  }
  0x4a   :  { %1177 = vmatpush3.bf16.msra.mxu1 %v1273_v4  ;;  %1158 = vmatprep.subr.bf16.mxu0 %v1496_v1  ;;  %v1289_v20 = vld [vmem:[#allocation11 + $0x38] sm:$0xff]   ;;  %v1291_v22 = vld [vmem:[#allocation11 + $0x30] sm:$0xff]   ;;  %v1293_v24 = vld [vmem:[#allocation11 + $0x28] sm:$0xff]  }
  0x4b   :  { %1178 = vmatprep.subr.bf16.mxu1 %v1496_v1  ;;  %v1294_v25 = vld [vmem:[#allocation11 + $0x60] sm:$0xff]   ;;  %v1296_v27 = vld [vmem:[#allocation11 + $0x58] sm:$0xff]   ;;  %v1298_v29 = vld [vmem:[#allocation11 + $0x50] sm:$0xff]  }
  0x4c   :  { %v1295_v26 = vld [vmem:[#allocation11 + $0x20] sm:$0xff]   ;;  %v1297_v28 = vld [vmem:[#allocation11 + $0x18] sm:$0xff]   ;;  %v1299_v30 = vld [vmem:[#allocation11 + $0x10] sm:$0xff]  }
  0x4d   :  { %1159 = vmatpush3.bf16.msra.mxu0 %v1274_v5  ;;  %v1300_v31 = vld [vmem:[#allocation11 + $0x48] sm:$0xff]   ;;  %v1302_v33 = vld [vmem:[#allocation11 + $0x40] sm:$0xff]   ;;  %v1304_v35 = vld [vmem:[#allocation13 + $0x38] sm:$0xff]  }
  0x4e   :  { %1179 = vmatpush3.bf16.msra.mxu1 %v1275_v6  ;;  %1160 = vmatprep.subr.bf16.mxu0 %v1496_v1  ;;  %v1301_v32 = vld [vmem:[#allocation11 + $0x8] sm:$0xff]   ;;  %v1303_v34 = vld [vmem:[#allocation11] sm:$0xff]   ;;  %v1305_v36 = vld [vmem:[#allocation13 + $0x30] sm:$0xff]  }
  0x4f   :  { %1180 = vmatprep.subr.bf16.mxu1 %v1496_v1  ;;  %v1306_v37 = vld [vmem:[#allocation13 + $0x28] sm:$0xff]   ;;  %v1307_v38 = vld [vmem:[#allocation13 + $0x20] sm:$0xff]   ;;  %v1018_v39 = vld [vmem:[%s1683_s5] ss:$0 sm:$0xff] }
  0x50   :  { %v1029_v40 = vld [vmem:[%s1683_s5 + $0x1] ss:$0 sm:$0xff]  ;;  %v1308_v59 = vld [vmem:[#allocation13 + $0x18] sm:$0xff]   ;;  %v1310_v61 = vld [vmem:[#allocation13 + $0x8] sm:$0xff]  }
  0x51   :  { %1161 = vmatpush3.bf16.msra.mxu0 %v1276_v7  ;;  %v1309_v60 = vld [vmem:[#allocation13 + $0x10] sm:$0xff]   ;;  %v1311_v62 = vld [vmem:[#allocation13] sm:$0xff]  }
  0x52   :  { %1181 = vmatpush3.bf16.msra.mxu1 %v1277_v8  ;;  %1162 = vmatprep.subr.bf16.mxu0 %v1496_v1  ;;  %v1039_v3 = vld [vmem:[%s1685_s7] ss:$0 sm:$0xff] }
  0x53   :  { %1182 = vmatprep.subr.bf16.mxu1 %v1496_v1 }
  0x55   :  { %1163 = vmatpush3.bf16.msra.mxu0 %v1278_v9 }
  0x56   :  { %1183 = vmatpush3.bf16.msra.mxu1 %v1279_v10  ;;  %1164 = vmatprep.subr.bf16.mxu0 %v1496_v1 }
  0x57   :  { %1184 = vmatprep.subr.bf16.mxu1 %v1496_v1 }
  0x59   :  { %1165 = vmatpush3.bf16.msra.mxu0 %v1280_v11 }
  0x5a   :  { %1185 = vmatpush3.bf16.msra.mxu1 %v1281_v12  ;;  %1166 = vmatprep.subr.bf16.mxu0 %v1496_v1  ;;  %v1312_v12 = vld [vmem:[#allocation8 + $0x38] sm:$0xff]  }
  0x5b   :  { %1186 = vmatprep.subr.bf16.mxu1 %v1496_v1 }
  0x5d   :  { %1167 = vmatpush3.bf16.msra.mxu0 %v1282_v13  ;;  %v1313_v13 = vld [vmem:[#allocation8 + $0x78] sm:$0xff]  }
  0x5e   :  { %1187 = vmatpush3.bf16.msra.mxu1 %v1283_v14  ;;  %1168 = vmatprep.subr.bf16.mxu0 %v1496_v1  ;;  %v1314_v14 = vld [vmem:[#allocation8 + $0x30] sm:$0xff]  }
  0x5f   :  { %1188 = vmatprep.subr.bf16.mxu1 %v1496_v1 }
  0x61   :  { %1169 = vmatpush3.bf16.msra.mxu0 %v1284_v15  ;;  %v1315_v15 = vld [vmem:[#allocation8 + $0x70] sm:$0xff]  }
  0x62   :  { %1189 = vmatpush3.bf16.msra.mxu1 %v1285_v16  ;;  %1105 = vmatprep.subr.bf16.mxu0 %v1288_v17  ;;  %v1316_v16 = vld [vmem:[#allocation8 + $0x28] sm:$0xff]  }
  0x63   :  { %1194 = vmatprep.subr.bf16.mxu1 %v1496_v1  ;;  %v1317_v17 = vld [vmem:[#allocation8 + $0x68] sm:$0xff]  }
  0x64   :  { %1171 = vmatmul.mubr.bf16.vlgmr.msra.gmra.mxu0 %v1286_v18  ;;  %v1318_v18 = vld [vmem:[#allocation8 + $0x20] sm:$0xff]  }
  0x65   :  { %1191 = vmatmul.mubr.bf16.vlgmr.msra.gmra.mxu1 %v1287_v19  ;;  %1106 = vmatpush3.bf16.msra.mxu0 %v1289_v20  ;;  %v1319_v19 = vld [vmem:[#allocation8 + $0x60] sm:$0xff]   ;;  %v1320_v20 = vld [vmem:[#allocation8 + $0x18] sm:$0xff]  }
  0x66   :  { %1107 = vmatprep.subr.bf16.mxu0 %v1290_v21  ;;  %1210 = vmatprep.mubr.msk.bf16.mxu1 %vm1497_vm0, %v1496_v1  ;;  %v1321_v21 = vld [vmem:[#allocation8 + $0x58] sm:$0xff]  }
  0x67   :  { %1195 = vmatpush3.bf16.msra.mxu1 %v1304_v35  ;;  %v665_v35 = vld [vmem:[%s1688_s10] sm:$0x3]  ;;  %s676_s10 = sld [smem:[#allocation3]] }
  0x68   :  { %1196 = vmatprep.subr.bf16.mxu1 %v1496_v1 }
  0x69   :  { %1108 = vmatpush3.bf16.msra.mxu0 %v1291_v22  ;;  %v1322_v22 = vld [vmem:[#allocation8 + $0x10] sm:$0xff]  }
  0x6a   :  { %1109 = vmatprep.subr.bf16.mxu0 %v1292_v23  ;;  %v1323_v23 = vld [vmem:[#allocation8 + $0x50] sm:$0xff]  }
  0x6b   :  { %1197 = vmatpush3.bf16.msra.mxu1 %v1305_v36 }
  0x6c   :  { %1198 = vmatprep.subr.bf16.mxu1 %v1496_v1 }
  0x6d   :  { %1110 = vmatpush3.bf16.msra.mxu0 %v1293_v24  ;;  %v1324_v24 = vld [vmem:[#allocation8 + $0x8] sm:$0xff]  }
  0x6e   :  { %1111 = vmatprep.subr.bf16.mxu0 %v1294_v25  ;;  %v1325_v25 = vld [vmem:[#allocation8 + $0x48] sm:$0xff]  }
  0x6f   :  { %1199 = vmatpush3.bf16.msra.mxu1 %v1306_v37 }
  0x70   :  { %1200 = vmatprep.subr.bf16.mxu1 %v1496_v1 }
  0x71   :  { %1112 = vmatpush3.bf16.msra.mxu0 %v1295_v26  ;;  %v1326_v26 = vld [vmem:[#allocation8] sm:$0xff]  }
  0x72   :  { %1113 = vmatprep.subr.bf16.mxu0 %v1296_v27  ;;  %v1327_v27 = vld [vmem:[#allocation8 + $0x40] sm:$0xff]  }
  0x73   :  { %1201 = vmatpush3.bf16.msra.mxu1 %v1307_v38 }
  0x74   :  { %1202 = vmatprep.subr.bf16.mxu1 %v1496_v1 }
  0x75   :  { %1114 = vmatpush3.bf16.msra.mxu0 %v1297_v28  ;;  %v1328_v28 = vld [vmem:[#allocation7] sm:$0xff]  }
  0x76   :  { %1115 = vmatprep.subr.bf16.mxu0 %v1298_v29  ;;  %v1329_v29 = vld [vmem:[#allocation7 + $0x8] sm:$0xff]  }
  0x77   :  { %1203 = vmatpush3.bf16.msra.mxu1 %v1308_v59 }
  0x78   :  { %1204 = vmatprep.subr.bf16.mxu1 %v1496_v1 }
  0x79   :  { %1116 = vmatpush3.bf16.msra.mxu0 %v1299_v30  ;;  %v666_v30 = vlaneseq }
  0x7a   :  { %1117 = vmatprep.subr.bf16.mxu0 %v1300_v31 }
  0x7b   :  { %1205 = vmatpush3.bf16.msra.mxu1 %v1309_v60  ;;  %v667_v31 = vshrl.u32 %v666_v30, 7 }
  0x7c   :  { %1206 = vmatprep.subr.bf16.mxu1 %v1496_v1 }
  0x7d   :  { %1118 = vmatpush3.bf16.msra.mxu0 %v1301_v32  ;;  %v682_v32 = vsub.s32 1, %v667_v31 }
  0x7e   :  { %1119 = vmatprep.subr.bf16.mxu0 %v1302_v33  ;;  %v668_v33 = vsub.s32 0, %v667_v31  ;;  %v1066_v31 = vld [vmem:[%s1681_s3] ss:$0 sm:$0xff] }
  0x7f   :  { %1207 = vmatpush3.bf16.msra.mxu1 %v1310_v61  ;;  %v683_v37 = vrot.slane %v665_v35, %v682_v32  ;;  %v1077_v32 = vld [vmem:[%s1681_s3 + $0x1] ss:$0 sm:$0xff]  ;;  %s1458_s3 = scalar_lea.vmem %s1004_s15, 256 }
  0x80   :  { %1208 = vmatprep.subr.bf16.mxu1 %v1496_v1  ;;  %v669_v38 = vrot.slane %v665_v35, %v668_v33  ;;  %p1459_p11 = scmp.ne.s32.totalorder %s1004_s15, %s1458_s3  ;;  %p1464_p13 = scmp.lt.s32.totalorder %s1458_s3, %s1458_s3 }
  0x81   :  { %1120 = vmatpush3.bf16.msra.mxu0 %v1303_v34  ;;  %v1056_v34 = vld [vmem:[%s1687_s9] ss:$0 sm:$0xff]  ;;  %s1065_s9 = sld [smem:[#allocation3 + $0x1]] }
  0x82   :  { %1214 = vmatprep.subr.bf16.mxu0 %v1496_v1  ;;  %p1465_p0 = por %p1464_p13, %p1463_p12 }
  0x83   :  { %1209 = vmatpush3.bf16.msra.mxu1 %v1311_v62 }
  0x84   :  { %1234 = vmatprep.subr.bf16.mxu1 %v1496_v1  ;;  %p1466_p1 = pnand %p1465_p0, %p1459_p11 }
 0x124   :  { %v236_v41 = vpop.f32.mrf.mxu0 }
 0x125   :  { %v237_v42 = vadd.f32 %v1018_v39, %v236_v41  ;;  %v362_v43 = vpop.f32.mrf.mxu1 }
 0x126   :  { %v363_v44 = vadd.f32 %v1029_v40, %v362_v43  ;;  %v1172_v45 = vpop.f32.mrf.mxu0 }
 0x127   :  { %v1192_v46 = vpop.f32.mrf.mxu1  ;;  %1330 = vtanh.f32 %v237_v42 }
 0x128   :  { %v239_v47 = vpop.f32.mrf.mxu0  ;;  %1332 = vtanh.f32 %v363_v44 }
 0x129   :  { %v240_v48 = vadd.f32 %v1018_v39, %v239_v47  ;;  %v365_v49 = vpop.f32.mrf.mxu1 }
 0x12a   :  { %v366_v50 = vadd.f32 %v1029_v40, %v365_v49  ;;  %v1173_v51 = vpop.f32.mrf.mxu0  ;;  %v1498_v49 = vmov 0  }
 0x12b   :  { %1334 = vtanh.f32 %v240_v48  ;;  %v1193_v52 = vpop.f32.mrf.mxu1  ;;  %1269 = vset.pattern.permute.xlu1 %v1498_v49  ;;  %1268 = vset.pattern.permute.xlu0 %v1498_v49 }
 0x12c   :  { %1336 = vtanh.f32 %v366_v50 }
 0x134   :  { %v1331_v53 = vpop.eup %1330 }
 0x135   :  { %v1333_v54 = vpop.eup %1332 }
 0x138   :  { %v1335_v55 = vpop.eup %1334 }
 0x139   :  { %v1337_v56 = vpop.eup %1336  ;;  %v245_v57 = vpack.c.bf16 %v1335_v55, %v1331_v53 }
 0x13a   :  { %v371_v58 = vpack.c.bf16 %v1337_v56, %v1333_v54  ;;  %v691_v56 = vstv %s1065_s9 }
 0x13c   :  { %539 = vmatprep.mubr.bf16.mxu0 %v371_v58 }
 0x13d   :  { %540 = vmatmul.mubr.bf16.vlgmr.msra.gmra.mxu0 %v245_v57  ;;  %v677_v57 = vstv %s676_s10 }
 0x13e   :  { %1230 = vmatprep.mubr.msk.bf16.mxu0 %vm1497_vm0, %v1496_v1  ;;  %1215 = vmatpush3.bf16.msra.mxu0 %v1312_v12 }
 0x13f   :  { %1216 = vmatprep.subr.bf16.mxu0 %v1496_v1 }
 0x142   :  { %1217 = vmatpush3.bf16.msra.mxu0 %v1314_v14 }
 0x143   :  { %1218 = vmatprep.subr.bf16.mxu0 %v1496_v1 }
 0x146   :  { %1219 = vmatpush3.bf16.msra.mxu0 %v1316_v16 }
 0x147   :  { %1220 = vmatprep.subr.bf16.mxu0 %v1496_v1 }
 0x14a   :  { %1221 = vmatpush3.bf16.msra.mxu0 %v1318_v18 }
 0x14b   :  { %1222 = vmatprep.subr.bf16.mxu0 %v1496_v1 }
 0x14e   :  { %1223 = vmatpush3.bf16.msra.mxu0 %v1320_v20 }
 0x14f   :  { %1224 = vmatprep.subr.bf16.mxu0 %v1496_v1 }
 0x152   :  { %1225 = vmatpush3.bf16.msra.mxu0 %v1322_v22 }
 0x153   :  { %1226 = vmatprep.subr.bf16.mxu0 %v1496_v1 }
 0x156   :  { %1227 = vmatpush3.bf16.msra.mxu0 %v1324_v24 }
 0x157   :  { %1228 = vmatprep.subr.bf16.mxu0 %v1496_v1 }
 0x15a   :  { %1229 = vmatpush3.bf16.msra.mxu0 %v1326_v26 }
 0x15d   :  { %1231 = vmatmul.mubr.bf16.vlgmr.msra.gmra.mxu0 %v1328_v28 }
 0x1fd   :  { %v1121_v63 = vpop.f32.mrf.mxu0 }
 0x1ff   :  { %v1122_v0 = vpop.f32.mrf.mxu0 }
 0x200   :  { %v1123_v2 = vadd.f32 %v1122_v0, %v1121_v63 }
 0x201   :  { %v1124_v4 = vpop.f32.mrf.mxu0 }
 0x202   :  { %v542_v6 = vadd.f32 %v1123_v2, %v1039_v3 }
 0x203   :  { %v1125_v5 = vpop.f32.mrf.mxu0 }
 0x204   :  { %v1126_v7 = vadd.f32 %v1125_v5, %v1124_v4  ;;  %v548_v9 = vmax.f32 %v542_v6, 0.0 }
 0x206   :  { %v545_v8 = vadd.f32 %v1126_v7, %v1039_v3 }
 0x208   :  { %v549_v10 = vmax.f32 %v545_v8, 0.0 }
 0x20a   :  { %v550_v11 = vpack.c.bf16 %v549_v10, %v548_v9 }
 0x20c   :  { %1211 = vmatmul.mubr.bf16.vlgmr.msra.gmra.mxu1 %v550_v11 }
 0x20d   :  { %1250 = vmatprep.mubr.msk.bf16.mxu1 %vm1497_vm0, %v1496_v1  ;;  %1235 = vmatpush3.bf16.msra.mxu1 %v1313_v13 }
 0x20e   :  { %1236 = vmatprep.subr.bf16.mxu1 %v1496_v1 }
 0x211   :  { %1237 = vmatpush3.bf16.msra.mxu1 %v1315_v15 }
 0x212   :  { %1238 = vmatprep.subr.bf16.mxu1 %v1496_v1 }
 0x215   :  { %1239 = vmatpush3.bf16.msra.mxu1 %v1317_v17 }
 0x216   :  { %1240 = vmatprep.subr.bf16.mxu1 %v1496_v1 }
 0x219   :  { %1241 = vmatpush3.bf16.msra.mxu1 %v1319_v19 }
 0x21a   :  { %1242 = vmatprep.subr.bf16.mxu1 %v1496_v1 }
 0x21d   :  { %1243 = vmatpush3.bf16.msra.mxu1 %v1321_v21  ;;  %v1660_v50 = vpop.f32.mrf.mxu0 }
 0x21e   :  { %1244 = vmatprep.subr.bf16.mxu1 %v1496_v1  ;;  %v838_v33 = vadd.f32 %v1066_v31, %v1660_v50 }
 0x21f   :  { %v1232_v52 = vpop.f32.mrf.mxu0 }
 0x221   :  { %1245 = vmatpush3.bf16.msra.mxu1 %v1323_v23  ;;  %v1664_v54 = vpop.f32.mrf.mxu0 }
 0x222   :  { %1246 = vmatprep.subr.bf16.mxu1 %v1496_v1 }
 0x223   :  { %v1233_v55 = vpop.f32.mrf.mxu0 }
 0x225   :  { %1247 = vmatpush3.bf16.msra.mxu1 %v1325_v25 }
 0x226   :  { %1248 = vmatprep.subr.bf16.mxu1 %v1496_v1 }
 0x229   :  { %1249 = vmatpush3.bf16.msra.mxu1 %v1327_v27 }
 0x22c   :  { %1251 = vmatmul.mubr.bf16.vlgmr.msra.gmra.mxu1 %v1329_v29 }
 0x2cc   :  { %v656_v36 = vpop.f32.mrf.mxu1 }
 0x2cd   :  { %v657_v1 = vadd.f32 %v1056_v34, %v656_v36 }
 0x2ce   :  { %v1212_v39 = vpop.f32.mrf.mxu1 }
 0x2cf   :  { %v663_v40 = vmax.f32 %v657_v1, 0.0 }
 0x2d0   :  { %v659_v41 = vpop.f32.mrf.mxu1 }
 0x2d1   :  { %v660_v42 = vadd.f32 %v1056_v34, %v659_v41  ;;  %v684_v43 = vmul.f32 %v683_v37, %v663_v40  ;;  %v670_v44 = vmul.f32 %v669_v38, %v663_v40  ;;  %v841_v40 = vadd.f32 %v1066_v31, %v1664_v54 }
 0x2d2   :  { %v1213_v45 = vpop.f32.mrf.mxu1 }
 0x2d3   :  { %v664_v46 = vmax.f32 %v660_v42, 0.0  ;;  %686 = vadd.xlane.f32.xlu1 %v684_v43  ;;  %672 = vadd.xlane.f32.xlu0 %v670_v44 }
 0x2d5   :  { %v685_v47 = vmul.f32 %v683_v37, %v664_v46  ;;  %v671_v48 = vmul.f32 %v669_v38, %v664_v46 }
 0x2d7   :  { %688 = vadd.xlane.f32.xlu1 %v685_v47  ;;  %674 = vadd.xlane.f32.xlu0 %v671_v48 }
 0x2ec   :  { %v1662_v51 = vpop.f32.mrf.mxu1 }
 0x2ed   :  { %v976_v34 = vadd.f32 %v1077_v32, %v1662_v51 }
 0x2ee   :  { %v1252_v53 = vpop.f32.mrf.mxu1 }
 0x2f0   :  { %v978_v25 = vpop.f32.mrf.mxu1 }
 0x2f1   :  { %v979_v41 = vadd.f32 %v1077_v32, %v978_v25 }
 0x2f2   :  { %v1253_v26 = vpop.f32.mrf.mxu1 }
 0x35c   :  { %v687_v58 = vpop.xlane.xlu1 %686  ;;  %v673_v59 = vpop.xlane.xlu0 %672 }
 0x35d   :  { %v692_v60 = vadd.f32 %v691_v56, %v687_v58  ;;  %v678_v61 = vadd.f32 %v677_v57, %v673_v59 }
 0x35f   :  { %v694_v62 = vmax.f32 %v678_v61, %v692_v60 }
 0x360   :  { %v689_v63 = vpop.xlane.xlu1 %688  ;;  %v675_v0 = vpop.xlane.xlu0 %674 }
 0x361   :  { %v696_v2 = vsub.f32 %v678_v61, %v694_v62  ;;  %v702_v3 = vsub.f32 %v692_v60, %v694_v62  ;;  %v693_v4 = vadd.f32 %v691_v56, %v689_v63  ;;  %v679_v5 = vadd.f32 %v677_v57, %v675_v0 }
 0x363   :  { %v698_v6 = vmul.f32 1.442695, %v696_v2  ;;  %v704_v7 = vmul.f32 1.442695, %v702_v3  ;;  %v695_v8 = vmax.f32 %v679_v5, %v693_v4 }
 0x365   :  { %1338 = vpow2.f32 %v698_v6  ;;  %v697_v9 = vsub.f32 %v679_v5, %v695_v8  ;;  %v703_v10 = vsub.f32 %v693_v4, %v695_v8 }
 0x366   :  { %1340 = vpow2.f32 %v704_v7 }
 0x367   :  { %v700_v11 = vmul.f32 1.442695, %v697_v9  ;;  %v706_v12 = vmul.f32 1.442695, %v703_v10 }
 0x369   :  { %1342 = vpow2.f32 %v700_v11 }
 0x36a   :  { %1344 = vpow2.f32 %v706_v12 }
 0x372   :  { %v1339_v13 = vpop.eup %1338 }
 0x373   :  { %v1341_v14 = vpop.eup %1340 }
 0x374   :  { %v708_v15 = vadd.f32 %v1341_v14, %v1339_v13 }
 0x376   :  { %v1343_v16 = vpop.eup %1342  ;;  %1346 = vrcp.f32 %v708_v15 }
 0x377   :  { %v1345_v17 = vpop.eup %1344 }
 0x378   :  { %v709_v18 = vadd.f32 %v1345_v17, %v1343_v16 }
 0x37a   :  { %1348 = vrcp.f32 %v709_v18 }
 0x383   :  { %v1347_v19 = vpop.eup %1346 }
 0x384   :  { %v712_v20 = vmul.f32 %v1347_v19, %v1339_v13  ;;  %v717_v21 = vmul.f32 %v1347_v19, %v1341_v14 }
 0x386   :  { %715 = vst.msk [vmem:[#allocation2] sm:$0xff] %vm714_vm1, %v712_v20  ;;  %720 = vst.msk [vmem:[#allocation2 + $0x10] sm:$0xff] %vm714_vm1, %v717_v21 }
 0x387   :  { %v1349_v22 = vpop.eup %1348 }
 0x388   :  { %v713_v23 = vmul.f32 %v1349_v22, %v1343_v16  ;;  %v718_v24 = vmul.f32 %v1349_v22, %v1345_v17 }
 0x38a   :  { %716 = vst.msk [vmem:[#allocation2 + $0x8] sm:$0xff] %vm714_vm1, %v713_v23  ;;  %721 = vst.msk [vmem:[#allocation2 + $0x18] sm:$0xff] %vm714_vm1, %v718_v24 }
 0x38d   :  { %v857_v27 = vld [vmem:[#allocation2 + $0x10] sm:$0xff]  ;;  %v722_v28 = vld [vmem:[#allocation2] sm:$0xff] }
 0x38e   :  { %984 = vperm.xlu1 %1269, %v857_v27   ;;  %846 = vperm.xlu0 %1268, %v722_v28  }
 0x391   :  { %v723_v29 = vld [vmem:[#allocation2 + $0x8] sm:$0xff]  ;;  %v858_v30 = vld [vmem:[#allocation2 + $0x18] sm:$0xff] }
 0x392   :  { %851 = vperm.xlu1 %1269, %v723_v29  }
 0x396   :  { %989 = vperm.xlu1 %1269, %v858_v30  }
 0x409   :  { %v985_v35 = vpop.permute.xlu1 %984  ;;  %v847_v36 = vpop.permute.xlu0 %846 }
 0x40a   :  { %v992_v1 = vmul.f32 %v985_v35, %v976_v34  ;;  %v854_v37 = vmul.f32 %v847_v36, %v838_v33 }
 0x40c   :  { %v994_v38 = vadd.f32 %v992_v1, %v854_v37 }
 0x40d   :  { %v852_v39 = vpop.permute.xlu1 %851 }
 0x40e   :  { %996 = vst [vmem:[#allocation14] sm:$0xff] %v994_v38  ;;  %v855_v43 = vmul.f32 %v852_v39, %v841_v40 }
 0x411   :  { %v990_v42 = vpop.permute.xlu1 %989 }
 0x412   :  { %v993_v44 = vmul.f32 %v990_v42, %v979_v41 }
 0x414   :  { %v995_v45 = vadd.f32 %v993_v44, %v855_v43 }
 0x416   :  { %997 = vst [vmem:[#allocation14 + $0x8] sm:$0xff] %v995_v45 }
 0x417   :  { %1469 = shalt.err (!%p1466_p1)
}
 0x418   :  { %s1500_s16 = smov 128   ;;  %s1501_s6 = smov 8  }
 0x419   :  { %1009 = dma.vmem_to_hbm [thread:$0]  %s1004_s15, 256, %s1689_s11, [#allocation5], %s1500_s16, %s1500_s16, %s1501_s6  }
 0x41a   :  { %1486 = dma.done.wait [#allocation5], 256  }
 0x41b   :  { %1487 = vsyncadd [#allocation5], 4294967040 }
 0x41c   :  { %1013 = vsyncpa [#allocation4], 1 }
 0x41d   :  { %1014 = vsyncpa [#allocation9], 1 }
 0x41e   :  { %1015 = vsyncpa [#allocation12], 1 }
 0x41f   :  { %1016 = vsyncpa [#allocation5], 1 }
 0x420   :  { %1017 = vsyncpa [#allocation6], 1 }

</bundles_post_ra>
